<compile_context>
chip_gen: v7x
topology: tpu7x:2x2x1
jax: 0.10.0
libtpu: 0.0.40
codegen_flags: <defaults>
</compile_context>

<pallas_src>
import functools
import math

import jax
import jax.numpy as jnp
from jax.experimental import pallas as pl
from jax.experimental.pallas import tpu as pltpu


def _rope_cache_kernel(inv_ref, lane_off_ref, cos_ref, sin_ref, *, fold: int):
    """Fill one (tile_rows, width) tile of the lane-folded cos/sin cache.

    inv_ref      : (1, width) f32 -- concat([inv_freq, inv_freq]) tiled `fold`x
    lane_off_ref : (1, width) f32 -- lane // dim (position offset inside a row)
    cos_ref/sin_ref : (tile_rows, width) in the cache dtype

    Folded layout: folded row r, lane l  <->  position p = r*fold + l//dim,
    rotary channel l % dim.  freqs = p * inv_freq_full[l % dim], computed as
    (row*fold + lane_off) * inv.  row*fold and the add are exact in f32 (fold
    is a power of two, positions < 2**24), so the single final multiply has the
    same rounding as the reference einsum.
    """
    i = pl.program_id(0)
    tile_rows, width = cos_ref.shape

    row = jax.lax.broadcasted_iota(jnp.int32, (tile_rows, width), 0) + i * tile_rows
    pos = row.astype(jnp.float32)
    if fold > 1:
        pos = pos * float(fold) + lane_off_ref[...]
    freqs = pos * inv_ref[...]

    # TODO(synk): on v7x (compute-bound) the upper half of every dim-chunk
    # duplicates the lower half; cos/sin could be computed on dim//2 unique
    # channels and replicated via XLU roll/select.  Skipped pending a bundle
    # dump -- v5e/v6e are store-bound, where the redundant EUP work is free.
    cos_ref[...] = jnp.cos(freqs).astype(cos_ref.dtype)
    sin_ref[...] = jnp.sin(freqs).astype(sin_ref.dtype)


def _choose_layout(max_pos: int, dim: int, itemsize: int, block_bytes: int):
    """Pick (fold, folded_rows, tile_rows) for a lane-dense, big-tile layout."""
    # Generalized lane folding: width = lcm(dim, 128), so every store is a
    # full-width unmasked vst for any head_dim (64/80/96/128/...).
    fold = math.lcm(dim, 128) // dim
    width = fold * dim
    if width > 1024:                        # pathological head_dim; keep simple
        fold, width = 1, dim
    folded_rows = -(-max_pos // fold)       # padded; extra positions sliced off

    # ~2 MiB per block by default: 2 outputs x 2 double-buffers = 8 MiB, well
    # under the 32 MiB scoped limit we request (and v5e's default headroom).
    budget_rows = max(8, (block_bytes // (width * itemsize)) // 8 * 8)
    if folded_rows <= budget_rows:
        # Whole cache in one block: zero extra grid-step overhead (best on the
        # single-TensorCore v5e/v6e; negligible loss on v7x at this size).
        return fold, folded_rows, folded_rows

    # Multi-step: even number of grid steps so v7x's two TensorCores split the
    # "parallel" axis evenly (an odd split wastes up to ~33% wall-clock).
    steps = -(-folded_rows // budget_rows)
    steps += steps % 2
    rows_per_step = -(-folded_rows // steps)
    tile_rows = -(-rows_per_step // 8) * 8
    return fold, folded_rows, tile_rows


def build_rope_cache(inv_freq: jax.Array, max_position_embeddings: int,
                     dtype=jnp.float32, block_bytes: int = 2 << 20):
    """Compute cos/sin caches of shape [max_position_embeddings, dim] in Pallas."""
    half = inv_freq.shape[0]
    dim = 2 * half
    itemsize = jnp.dtype(dtype).itemsize
    fold, folded_rows, tile_rows = _choose_layout(
        max_position_embeddings, dim, itemsize, block_bytes)
    width = fold * dim

    # Host-side prep (once): duplicated+tiled inv_freq and the per-lane
    # position offset (lane // dim).  Removes the in-kernel lane iota, integer
    # divide and concat -- the body is a pure broadcast multiply-add.
    inv_full = jnp.concatenate([inv_freq, inv_freq]).astype(jnp.float32)
    inv_tiled = jnp.tile(inv_full, (fold,)).reshape(1, width)
    lane_off = (jnp.arange(width, dtype=jnp.int32) // dim).astype(
        jnp.float32).reshape(1, width)

    grid = (-(-folded_rows // tile_rows),)
    kernel = functools.partial(_rope_cache_kernel, fold=fold)

    cos_f, sin_f = pl.pallas_call(
        kernel,
        out_shape=(
            jax.ShapeDtypeStruct((folded_rows, width), dtype),
            jax.ShapeDtypeStruct((folded_rows, width), dtype),
        ),
        grid_spec=pltpu.PrefetchScalarGridSpec(
            num_scalar_prefetch=0,
            grid=grid,
            in_specs=[
                pl.BlockSpec((1, width), lambda i: (0, 0)),
                pl.BlockSpec((1, width), lambda i: (0, 0)),
            ],
            out_specs=(
                pl.BlockSpec((tile_rows, width), lambda i: (i, 0)),
                pl.BlockSpec((tile_rows, width), lambda i: (i, 0)),
            ),
        ),
        compiler_params=pltpu.CompilerParams(
            dimension_semantics=("parallel",),
            vmem_limit_bytes=32 * 1024 * 1024),
    )(inv_tiled, lane_off)

    # Unfold back to [*, dim] (free row-major reshape) and drop padded positions.
    cos = cos_f.reshape(folded_rows * fold, dim)[:max_position_embeddings]
    sin = sin_f.reshape(folded_rows * fold, dim)[:max_position_embeddings]
    return cos, sin


class LlamaRotaryEmbeddingPallas:
    """JAX/Pallas port of LlamaRotaryEmbedding (rope_type='default')."""

    def __init__(self, head_dim: int, max_position_embeddings: int,
                 rope_theta: float = 10000.0, cache_dtype=jnp.float32):
        self.max_position_embeddings = max_position_embeddings
        # default ROPE init: inv_freq = 1 / theta^(arange(0, dim, 2)/dim)
        exponent = jnp.arange(0, head_dim, 2, dtype=jnp.float32) / float(head_dim)
        self.inv_freq = 1.0 / (rope_theta ** exponent)          # (head_dim//2,)
        # Build the cache directly in `cache_dtype`.  For bf16 models pass
        # jnp.bfloat16 to halve HBM bytes and make __call__ a pure slice.
        self.cos_cached, self.sin_cached = build_rope_cache(
            self.inv_freq, max_position_embeddings, dtype=cache_dtype)

    def __call__(self, x: jax.Array, seq_len: int):
        if seq_len > self.max_position_embeddings:
            raise ValueError("seq length should less than max embedding")
        cos = self.cos_cached[:seq_len, :]
        sin = self.sin_cached[:seq_len, :]
        if cos.dtype != x.dtype:   # no-op when cache_dtype == model dtype
            cos = cos.astype(x.dtype)
            sin = sin.astype(x.dtype)
        return cos, sin


def _reference_cache(inv_freq: jax.Array, max_pos: int):
    t = jnp.arange(max_pos, dtype=jnp.float32)
    freqs = jnp.einsum("i,j->ij", t, inv_freq)
    emb = jnp.concatenate([freqs, freqs], axis=-1)
    return jnp.cos(emb), jnp.sin(emb)


if __name__ == "__main__":
    # Small, deterministic config: hidden=256, heads=4 -> head_dim=64.
    batch, num_heads, seq_len, head_dim = 2, 4, 8, 64
    max_position_embeddings = 128

    key = jax.random.PRNGKey(0)
    x = jax.random.normal(key, (batch, num_heads, seq_len, head_dim),
                          dtype=jnp.float32)

    rope = LlamaRotaryEmbeddingPallas(head_dim, max_position_embeddings)
    cos, sin = rope(x, seq_len=seq_len)
    jax.block_until_ready((cos, sin))

    # Reference check (plain JAX) against the full cache and the sliced output.
    cos_full_ref, sin_full_ref = _reference_cache(rope.inv_freq,
                                                  max_position_embeddings)
    assert cos.shape == (seq_len, head_dim) and sin.shape == (seq_len, head_dim)
    assert jnp.allclose(rope.cos_cached, cos_full_ref, atol=1e-5, rtol=1e-5)
    assert jnp.allclose(rope.sin_cached, sin_full_ref, atol=1e-5, rtol=1e-5)
    assert jnp.allclose(cos, cos_full_ref[:seq_len].astype(x.dtype),
                        atol=1e-5, rtol=1e-5)
    assert jnp.allclose(sin, sin_full_ref[:seq_len].astype(x.dtype),
                        atol=1e-5, rtol=1e-5)

    # Odd max_pos with fold=2: exercises the padded trailing position.
    max_pos2 = 101
    rope2 = LlamaRotaryEmbeddingPallas(head_dim, max_pos2)
    cos2_ref, sin2_ref = _reference_cache(rope2.inv_freq, max_pos2)
    jax.block_until_ready((rope2.cos_cached, rope2.sin_cached))
    assert rope2.cos_cached.shape == (max_pos2, head_dim)
    assert jnp.allclose(rope2.cos_cached, cos2_ref, atol=1e-5, rtol=1e-5)
    assert jnp.allclose(rope2.sin_cached, sin2_ref, atol=1e-5, rtol=1e-5)

    # head_dim=80 exercises the generalized lane fold (fold=8, width=640)
    # plus padded trailing positions (90 -> 96).
    rope3 = LlamaRotaryEmbeddingPallas(80, 90)
    cos3_ref, sin3_ref = _reference_cache(rope3.inv_freq, 90)
    jax.block_until_ready((rope3.cos_cached, rope3.sin_cached))
    assert rope3.cos_cached.shape == (90, 80)
    assert jnp.allclose(rope3.cos_cached, cos3_ref, atol=1e-5, rtol=1e-5)
    assert jnp.allclose(rope3.sin_cached, sin3_ref, atol=1e-5, rtol=1e-5)

    # Forced multi-step grid (small block budget) with a partial last block:
    # head_dim=128 (fold=1 path), 500 positions, 32 KiB blocks -> 8 grid steps.
    exp4 = jnp.arange(0, 128, 2, dtype=jnp.float32) / 128.0
    inv4 = 1.0 / (10000.0 ** exp4)
    cos4, sin4 = build_rope_cache(inv4, 500, dtype=jnp.float32,
                                  block_bytes=32 * 1024)
    cos4_ref, sin4_ref = _reference_cache(inv4, 500)
    jax.block_until_ready((cos4, sin4))
    assert cos4.shape == (500, 128)
    assert jnp.allclose(cos4, cos4_ref, atol=1e-4, rtol=1e-4)
    assert jnp.allclose(sin4, sin4_ref, atol=1e-4, rtol=1e-4)

    print("KERNEL_OK")
</pallas_src>

<mosaic_0001>
module attributes {stable_mosaic.version = 11 : i64} {
  func.func @_rope_cache_kernel(%arg0: i32, %arg1: memref<1x128xf32, #tpu.memory_space<vmem>>, %arg2: memref<1x128xf32, #tpu.memory_space<vmem>>, %arg3: memref<64x128xf32, #tpu.memory_space<vmem>>, %arg4: memref<64x128xf32, #tpu.memory_space<vmem>>) attributes {dimension_semantics = [#tpu.dimension_semantics<parallel>], iteration_bounds = array<i64: 1>, scalar_prefetch = 0 : i64, scratch_operands = 0 : i64, tpu.core_type = #tpu.core_type<tc>, window_params = [{pipeline_mode = #tpu.pipeline_mode<synchronous>, transform_indices = @transform_0, window_bounds = array<i64: 1, 128>}, {pipeline_mode = #tpu.pipeline_mode<synchronous>, transform_indices = @transform_1, window_bounds = array<i64: 1, 128>}, {transform_indices = @transform_2, window_bounds = array<i64: 64, 128>}, {transform_indices = @transform_3, window_bounds = array<i64: 64, 128>}]} {
    %0 = tpu.iota {dimensions = array<i32: 0>} : vector<64x128xi32>
    %c64_i32 = arith.constant 64 : i32
    %1 = arith.muli %arg0, %c64_i32 : i32
    %2 = vector.broadcast %1 : i32 to vector<64x128xi32>
    %3 = arith.addi %0, %2 : vector<64x128xi32>
    %4 = arith.sitofp %3 : vector<64x128xi32> to vector<64x128xf32>
    %cst = arith.constant 2.000000e+00 : f32
    %5 = vector.broadcast %cst : f32 to vector<64x128xf32>
    %6 = arith.mulf %4, %5 : vector<64x128xf32>
    %c0 = arith.constant 0 : index
    %c0_0 = arith.constant 0 : index
    %7 = vector.load %arg2[%c0, %c0_0] : memref<1x128xf32, #tpu.memory_space<vmem>>, vector<1x128xf32>
    %8 = vector.broadcast %7 : vector<1x128xf32> to vector<64x128xf32>
    %9 = arith.addf %6, %8 : vector<64x128xf32>
    %c0_1 = arith.constant 0 : index
    %c0_2 = arith.constant 0 : index
    %10 = vector.load %arg1[%c0_1, %c0_2] : memref<1x128xf32, #tpu.memory_space<vmem>>, vector<1x128xf32>
    %11 = vector.broadcast %10 : vector<1x128xf32> to vector<64x128xf32>
    %12 = arith.mulf %9, %11 : vector<64x128xf32>
    %13 = math.cos %12 : vector<64x128xf32>
    %c0_3 = arith.constant 0 : index
    %c0_4 = arith.constant 0 : index
    %14 = vector.load %arg3[%c0_3, %c0_4] : memref<64x128xf32, #tpu.memory_space<vmem>>, vector<64x128xf32>
    tpu.vector_store %arg3[%c0_3, %c0_4], %13 {strides = array<i32>} : memref<64x128xf32, #tpu.memory_space<vmem>>, vector<64x128xf32>,
    %15 = math.sin %12 : vector<64x128xf32>
    %c0_5 = arith.constant 0 : index
    %c0_6 = arith.constant 0 : index
    %16 = vector.load %arg4[%c0_5, %c0_6] : memref<64x128xf32, #tpu.memory_space<vmem>>, vector<64x128xf32>
    tpu.vector_store %arg4[%c0_5, %c0_6], %15 {strides = array<i32>} : memref<64x128xf32, #tpu.memory_space<vmem>>, vector<64x128xf32>,
    return
  }
  func.func @transform_0(%arg0: i32) -> (i32, i32) {
    %c0_i32 = arith.constant 0 : i32
    %c0_i32_0 = arith.constant 0 : i32
    %c0_i32_1 = arith.constant 0 : i32
    return %c0_i32, %c0_i32_0 : i32, i32
  }
  func.func @transform_1(%arg0: i32) -> (i32, i32) {
    %c0_i32 = arith.constant 0 : i32
    %c0_i32_0 = arith.constant 0 : i32
    %c0_i32_1 = arith.constant 0 : i32
    return %c0_i32, %c0_i32_0 : i32, i32
  }
  func.func @transform_2(%arg0: i32) -> (i32, i32) {
    %c0_i32 = arith.constant 0 : i32
    %c0_i32_0 = arith.constant 0 : i32
    return %arg0, %c0_i32 : i32, i32
  }
  func.func @transform_3(%arg0: i32) -> (i32, i32) {
    %c0_i32 = arith.constant 0 : i32
    %c0_i32_0 = arith.constant 0 : i32
    return %arg0, %c0_i32 : i32, i32
  }
}

</mosaic_0001>

<bundles_post_ra>
// kernel: tpu_custom_call.1
= control target key start
LH: loop header
LB: loop body
LE: loop exit
PB: predicated region body
PF: predicated region fallthrough
CT: control target
= control target key end

     0   :  { %9 = vsyncpa [#allocation3], 0  ;;  %s2912_s0 = inlined_call_operand.hbm [shape: f32[1,128], index: 0, kind: input, shape index: {}]   ;;  %s2913_s1 = inlined_call_operand.vmem [shape: f32[1,128], index: 1, kind: input, shape index: {}]   ;;  %s2914_s2 = inlined_call_operand.hbm [shape: f32[64,128], index: 2, kind: output, shape index: {0}]   ;;  %s2915_s3 = inlined_call_operand.hbm [shape: f32[64,128], index: 3, kind: output, shape index: {1}]  }
   0x1   :  { %10 = vsyncpa [#allocation4], 0 }
   0x2   :  { %11 = vsyncpa [#allocation7], 0  ;;  %s2012_s12 = smov [#allocation2]   ;;  %s1940_s16 = scalar_lea.hbm %s2912_s0, 16 }
   0x3   :  { %s18_s13 = sshll.u32 %s2012_s12, 4  ;;  %p1941_p0 = scmp.ne.s32.totalorder %s2912_s0, %s1940_s16  ;;  %s19_s13 = int_to_ptr.vmem [resolvable:$true] %s18_s13 }
   0x4   :  { %p1944_p1 = scmp.lt.u32.totalorder %s1940_s16, %s2912_s0 }
   0x6   :  { %p1946_p2 = pnand %p1944_p1, %p1941_p0 }
   0x8   :  { %1949 = shalt.err (!%p1946_p2)
}
   0x9   :  { %s1950_s21 = scalar_lea.vmem %s19_s13, 16  ;;  %s1954_s22 = scalar_lea.vmem %s19_s13, 32 }
   0xa   :  { %p1951_p3 = scmp.ne.s32.totalorder %s19_s13, %s1950_s21  ;;  %p1955_p4 = scmp.lt.s32.totalorder %s19_s13, %s19_s13 }
   0xb   :  { %p1956_p5 = scmp.lt.s32.totalorder %s1954_s22, %s1950_s21 }
   0xd   :  { %p1957_p6 = por %p1956_p5, %p1955_p4 }
   0xf   :  { %p1958_p7 = pnand %p1957_p6, %p1951_p3 }
  0x11   :  { %1961 = shalt.err (!%p1958_p7)
}
  0x12   :  { %21 = dma.hbm_to_vmem [thread:$0]  %s2912_s0, 16, %s19_s13, [#allocation3]  }
  0x13   :  { %2006 = dma.done.wait [#allocation3], 16  }
  0x14   :  { %2007 = vsyncadd [#allocation3], 4294967280  ;;  %v27_v0 = vlaneseq  ;;  %v2058_v8 = vld [vmem:[%s2913_s1] ss:$0 sm:$0xff]  ;;  %v2013_v57 = vmov 683565275  }
  0x15   :  { %v2060_v9 = vld [vmem:[#allocation2] ss:$0 sm:$0xff]  ;;  %v2014_v59 = vmov 2475754826   ;;  %v2015_v61 = vmov 2131351028  }
  0x16   :  { %v28_v1 = vshrl.u32 %v27_v0, 7  ;;  %v2016_v63 = vmov 2102212464   ;;  %s2020_s29 = smov [#allocation6]  }
  0x17   :  { %s1781_s30 = sshll.u32 %s2020_s29, 4  ;;  %s2881_s30 = int_to_ptr.vmem [resolvable:$true] %s1781_s30 }
  0x18   :  { %v46_v2 = vcvt.s32.f32 %v28_v1  ;;  %v29_v3 = vadd.s32 8, %v28_v1  ;;  %v30_v4 = vadd.s32 16, %v28_v1  ;;  %v31_v16 = vadd.s32 24, %v28_v1 }
  0x19   :  { %v32_v17 = vadd.s32 32, %v28_v1  ;;  %v33_v20 = vadd.s32 40, %v28_v1  ;;  %v34_v21 = vadd.s32 48, %v28_v1  ;;  %v2083_v36 = vadd.s32 56, %v28_v1 }
  0x1a   :  { %v54_v5 = vmul.f32 2.0, %v46_v2  ;;  %v47_v6 = vcvt.s32.f32 %v29_v3  ;;  %v48_v7 = vcvt.s32.f32 %v30_v4  ;;  %v49_v25 = vcvt.s32.f32 %v31_v16 }
  0x1b   :  { %v50_v30 = vcvt.s32.f32 %v32_v17  ;;  %v51_v31 = vcvt.s32.f32 %v33_v20  ;;  %v52_v32 = vcvt.s32.f32 %v34_v21  ;;  %v53_v48 = vcvt.s32.f32 %v2083_v36 }
  0x1c   :  { %v69_v10 = vadd.f32 %v2058_v8, %v54_v5  ;;  %v55_v11 = vmul.f32 2.0, %v47_v6  ;;  %v56_v12 = vmul.f32 2.0, %v48_v7  ;;  %v57_v38 = vmul.f32 2.0, %v49_v25 }
  0x1d   :  { %v2085_v43 = vmul.f32 2.0, %v50_v30  ;;  %v2087_v44 = vmul.f32 2.0, %v51_v31  ;;  %v2089_v47 = vmul.f32 2.0, %v52_v32  ;;  %v2017_v1 = vmov 920167782  }
  0x1e   :  { %v2064_v13 = vmul.f32 %v2060_v9, %v69_v10  ;;  %v70_v14 = vadd.f32 %v2058_v8, %v55_v11  ;;  %v71_v15 = vadd.f32 %v2058_v8, %v56_v12  ;;  %v2094_v52 = vadd.f32 %v2058_v8, %v57_v38 }
  0x1f   :  { %v2018_v10 = vmov 1326507024  }
  0x20   :  { %v92_v18 = vand.u32 2147483647, %v2064_v13  ;;  %v95_v19 = vand.u32 2139095040, %v2064_v13  ;;  %v2071_v22 = vmul.f32 %v2060_v9, %v70_v14  ;;  %v2074_v23 = vmul.f32 %v2060_v9, %v71_v15 }
  0x22   :  { %v96_v24 = vshrl.u32 %v95_v19, 23  ;;  %v99_v26 = vand.u32 8388607, %v92_v18  ;;  %v195_v27 = vand.u32 2147483647, %v2071_v22  ;;  %v198_v28 = vand.u32 2139095040, %v2071_v22 }
  0x23   :  { %v301_v35 = vand.u32 2139095040, %v2074_v23  ;;  %v298_v51 = vand.u32 2147483647, %v2074_v23 }
  0x24   :  { %v1799_v29 = vadd.s32 4294967169, %v96_v24  ;;  %v199_v33 = vshrl.u32 %v198_v28, 23  ;;  %v202_v34 = vand.u32 8388607, %v195_v27  ;;  %v100_v39 = vor.u32 8388608, %v99_v26 }
  0x25   :  { %v302_v42 = vshrl.u32 %v301_v35, 23 }
  0x26   :  { %v102_v37 = vadd.s32 1, %v1799_v29  ;;  %v1803_v40 = vadd.s32 4294967169, %v199_v33  ;;  %v203_v41 = vor.u32 8388608, %v202_v34  ;;  %v2096_v53 = vshll.u32 %v100_v39, 8 }
  0x27   :  { %v2100_v55 = vadd.s32 4294967169, %v302_v42 }
  0x28   :  { %vm103_vm0 = vcmp.gt.s32.totalorder %v102_v37, 0  ;;  %v205_v46 = vadd.s32 1, %v1803_v40  ;;  %v2098_v54 = vshll.u32 %v203_v41, 8 }
  0x29   :  { %v104_v45 = vsel %vm103_vm0, %v102_v37, 0 }
  0x2a   :  { %v105_v49 = vshrl.u32 %v104_v45, 5  ;;  %v106_v50 = vand.u32 31, %v104_v45  ;;  %vm206_vm1 = vcmp.gt.s32.totalorder %v205_v46, 0 }
  0x2b   :  { %v207_v16 = vsel %vm206_vm1, %v205_v46, 0 }
  0x2c   :  { %v107_v56 = vsub.s32 32, %v106_v50  ;;  %v109_v58 = vshll.u32 %v2013_v57, %v106_v50  ;;  %v112_v60 = vshll.u32 %v2014_v59, %v106_v50  ;;  %v115_v62 = vshll.u32 %v2015_v61, %v106_v50 }
  0x2d   :  { %v118_v0 = vshll.u32 %v2016_v63, %v106_v50  ;;  %v121_v2 = vshll.u32 %v2017_v1, %v106_v50  ;;  %vm124_vm2 = vcmp.lt.s32.totalorder %v105_v49, 1  ;;  %vm125_vm3 = vcmp.lt.s32.totalorder %v105_v49, 2 }
  0x2e   :  { %v108_v3 = vshrl.u32 %v2013_v57, %v107_v56  ;;  %v110_v4 = vshrl.u32 %v2014_v59, %v107_v56  ;;  %v113_v5 = vshrl.u32 %v2015_v61, %v107_v56  ;;  %v116_v6 = vshrl.u32 %v2016_v63, %v107_v56 }
  0x2f   :  { %v119_v7 = vshrl.u32 %v2017_v1, %v107_v56  ;;  %v122_v11 = vshrl.u32 %v2018_v10, %v107_v56  ;;  %vm126_vm4 = vcmp.lt.s32.totalorder %v105_v49, 3  ;;  %vm127_vm5 = vcmp.lt.s32.totalorder %v105_v49, 4 }
  0x30   :  { %v111_v12 = vor.u32 %v110_v4, %v109_v58  ;;  %v114_v14 = vor.u32 %v113_v5, %v112_v60  ;;  %v117_v15 = vor.u32 %v116_v6, %v115_v62  ;;  %v208_v20 = vshrl.u32 %v207_v16, 5 }
  0x31   :  { %v120_v17 = vor.u32 %v119_v7, %v118_v0  ;;  %v123_v19 = vor.u32 %v122_v11, %v121_v2  ;;  %v209_v21 = vand.u32 31, %v207_v16  ;;  %v308_v11 = vadd.s32 1, %v2100_v55 }
  0x32   :  { %v128_v24 = vsel %vm124_vm2, %v108_v3, %v111_v12  ;;  %v129_v25 = vsel %vm127_vm5, %v117_v15, 2102212464  ;;  %v132_v26 = vsel %vm124_vm2, %v111_v12, %v114_v14  ;;  %v136_v28 = vsel %vm124_vm2, %v114_v14, %v117_v15 }
  0x33   :  { %v130_v29 = vsel %vm126_vm4, %v114_v14, %v129_v25  ;;  %v133_v30 = vsel %vm127_vm5, %v120_v17, 920167782  ;;  %v137_v31 = vsel %vm127_vm5, %v123_v19, 1326507024  ;;  %v210_v32 = vsub.s32 32, %v209_v21 }
  0x34   :  { %v131_v33 = vsel %vm125_vm3, %v128_v24, %v130_v29  ;;  %v134_v34 = vsel %vm126_vm4, %v117_v15, %v133_v30  ;;  %v138_v35 = vsel %vm126_vm4, %v120_v17, %v137_v31  ;;  %v212_v37 = vshll.u32 %v2013_v57, %v209_v21 }
  0x35   :  { %v135_v38 = vsel %vm125_vm3, %v132_v26, %v134_v34  ;;  %v139_v39 = vsel %vm125_vm3, %v136_v28, %v138_v35  ;;  %v147_v40 = vmul.u32 %v2096_v53, %v131_v33  ;;  %v211_v41 = vshrl.u32 %v2013_v57, %v210_v32 }
  0x36   :  { %v2127_v42 = vmul.u32.u64.low %v2096_v53, %v139_v39  ;;  %v2128_v45 = vmul.u32.u64.high %v2096_v53, %v139_v39, %v2127_v42  ;;  %v2131_v46 = vmul.u32.u64.low %v2096_v53, %v135_v38  ;;  %v2132_v50 = vmul.u32.u64.high %v2096_v53, %v135_v38, %v2131_v46 }
  0x37   :  { %v213_v56 = vshrl.u32 %v2014_v59, %v210_v32  ;;  %v215_v58 = vshll.u32 %v2014_v59, %v209_v21  ;;  %v216_v49 = vshrl.u32 %v2015_v61, %v210_v32  ;;  %v218_v60 = vshll.u32 %v2015_v61, %v209_v21 }
  0x38   :  { %v219_v62 = vshrl.u32 %v2016_v63, %v210_v32  ;;  %v221_v0 = vshll.u32 %v2016_v63, %v209_v21  ;;  %v222_v2 = vshrl.u32 %v2017_v1, %v210_v32  ;;  %v224_v3 = vshll.u32 %v2017_v1, %v209_v21 }
  0x39   :  { %v214_v4 = vor.u32 %v213_v56, %v212_v37  ;;  %v217_v53 = vor.u32 %v216_v49, %v215_v58  ;;  %v225_v5 = vshrl.u32 %v2018_v10, %v210_v32  ;;  %vm227_vm6 = vcmp.lt.s32.totalorder %v208_v20, 1 }
  0x3a   :  { %vm149_vm7 = vc.u32 %v2128_v45, %v2131_v46  ;;  %v150_v6 = vadd.s32 1, %v2132_v50  ;;  %v220_v7 = vor.u32 %v219_v62, %v218_v60  ;;  %v223_v12 = vor.u32 %v222_v2, %v221_v0 }
  0x3b   :  { %v226_v14 = vor.u32 %v225_v5, %v224_v3  ;;  %vm228_vm8 = vcmp.lt.s32.totalorder %v208_v20, 2  ;;  %vm229_vm9 = vcmp.lt.s32.totalorder %v208_v20, 3  ;;  %vm230_vm10 = vcmp.lt.s32.totalorder %v208_v20, 4 }
  0x3c   :  { %v151_v15 = vsel %vm149_vm7, %v150_v6, %v2132_v50  ;;  %v231_v16 = vsel %vm227_vm6, %v211_v41, %v214_v4  ;;  %v235_v17 = vsel %vm227_vm6, %v214_v4, %v217_v53  ;;  %v232_v21 = vsel %vm230_vm10, %v220_v7, 2102212464 }
  0x3d   :  { %v152_v19 = vadd.s32 %v151_v15, %v147_v40  ;;  %v236_v24 = vsel %vm230_vm10, %v223_v12, 920167782  ;;  %v239_v25 = vsel %vm227_vm6, %v217_v53, %v220_v7  ;;  %v233_v26 = vsel %vm229_vm9, %v217_v53, %v232_v21 }
  0x3e   :  { %v237_v28 = vsel %vm229_vm9, %v220_v7, %v236_v24  ;;  %v240_v29 = vsel %vm230_vm10, %v226_v14, 1326507024  ;;  %vm309_vm11 = vcmp.gt.s32.totalorder %v308_v11, 0  ;;  %v305_v32 = vand.u32 8388607, %v298_v51 }
  0x3f   :  { %v153_v55 = vadd.s32 536870912, %v152_v19  ;;  %v238_v30 = vsel %vm228_vm8, %v235_v17, %v237_v28  ;;  %v241_v31 = vsel %vm229_vm9, %v223_v12, %v240_v29  ;;  %v234_v33 = vsel %vm228_vm8, %v231_v16, %v233_v26 }
  0x40   :  { %v242_v34 = vsel %vm228_vm8, %v239_v25, %v241_v31  ;;  %v2158_v35 = vmul.u32.u64.low %v2098_v54, %v238_v30  ;;  %v2159_v37 = vmul.u32.u64.high %v2098_v54, %v238_v30, %v2158_v35  ;;  %v310_v41 = vsel %vm309_vm11, %v308_v11, 0 }
  0x41   :  { %v2162_v38 = vshrl.u32 %v153_v55, 30  ;;  %v2165_v39 = vmul.u32.u64.low %v2098_v54, %v242_v34  ;;  %v2166_v40 = vmul.u32.u64.high %v2098_v54, %v242_v34, %v2165_v39  ;;  %v312_v42 = vand.u32 31, %v310_v41 }
  0x42   :  { %v73_v50 = vadd.f32 %v2058_v8, %v2085_v43  ;;  %v74_v20 = vadd.f32 %v2058_v8, %v2087_v44  ;;  %v250_v58 = vmul.u32 %v2098_v54, %v234_v33  ;;  %v253_v49 = vadd.s32 1, %v2159_v37 }
  0x43   :  { %v155_v56 = vshll.u32 %v2162_v38, 30  ;;  %v313_v60 = vsub.s32 32, %v312_v42  ;;  %v2177_v62 = vadd.f32 %v2058_v8, %v2089_v47  ;;  %v2181_v0 = vmul.f32 2.0, %v53_v48 }
  0x44   :  { %vm252_vm12 = vc.u32 %v2166_v40, %v2158_v35  ;;  %v306_v43 = vor.u32 8388608, %v305_v32  ;;  %v2189_v44 = vmul.f32 %v2060_v9, %v2094_v52  ;;  %v315_v3 = vshll.u32 %v2013_v57, %v312_v42 }
  0x45   :  { %v2183_v2 = vsub.s32 %v152_v19, %v155_v56  ;;  %v254_v54 = vsel %vm252_vm12, %v253_v49, %v2159_v37  ;;  %v2194_v8 = vmul.f32 %v2060_v9, %v73_v50  ;;  %v2197_v36 = vmul.f32 %v2060_v9, %v74_v20 }
  0x46   :  { %v255_v48 = vadd.s32 %v254_v54, %v250_v58  ;;  %v316_v4 = vshrl.u32 %v2014_v59, %v313_v60  ;;  %v318_v53 = vshll.u32 %v2014_v59, %v312_v42  ;;  %v319_v52 = vshrl.u32 %v2015_v61, %v313_v60 }
  0x47   :  { %v158_v47 = vsub.s32 0, %v2183_v2  ;;  %v321_v5 = vshll.u32 %v2015_v61, %v312_v42  ;;  %v322_v6 = vshrl.u32 %v2016_v63, %v313_v60  ;;  %v324_v7 = vshll.u32 %v2016_v63, %v312_v42 }
  0x48   :  { %v311_v12 = vshrl.u32 %v310_v41, 5  ;;  %v2207_v14 = vshll.u32 %v306_v43, 8  ;;  %v401_v15 = vand.u32 2147483647, %v2189_v44  ;;  %v256_v16 = vadd.s32 536870912, %v255_v48 }
  0x49   :  { %v1800_v11 = vmin.u32 %v158_v47, %v2183_v2  ;;  %v314_v17 = vshrl.u32 %v2013_v57, %v313_v60  ;;  %v325_v19 = vshrl.u32 %v2017_v1, %v313_v60  ;;  %v404_v21 = vand.u32 2139095040, %v2189_v44 }
  0x4a   :  { %v317_v25 = vor.u32 %v316_v4, %v315_v3  ;;  %v327_v26 = vshll.u32 %v2017_v1, %v312_v42  ;;  %v328_v28 = vshrl.u32 %v2018_v10, %v313_v60  ;;  %v2215_v29 = vshrl.u32 %v256_v16, 30 }
  0x4b   :  { %v160_v24 = vclz %v1800_v11  ;;  %v320_v55 = vor.u32 %v319_v52, %v318_v53  ;;  %v323_v30 = vor.u32 %v322_v6, %v321_v5  ;;  %v326_v31 = vor.u32 %v325_v19, %v324_v7 }
  0x4c   :  { %v148_v32 = vadd.s32 %v2131_v46, %v2128_v45  ;;  %vm330_vm13 = vcmp.lt.s32.totalorder %v311_v12, 1  ;;  %vm333_vm14 = vcmp.lt.s32.totalorder %v311_v12, 4  ;;  %v258_v34 = vshll.u32 %v2215_v29, 30 }
  0x4d   :  { %v1801_v33 = vadd.s32 4294967294, %v160_v24  ;;  %v329_v37 = vor.u32 %v328_v28, %v327_v26  ;;  %v335_v39 = vsel %vm333_vm14, %v323_v30, 2102212464  ;;  %v405_v41 = vshrl.u32 %v404_v21, 23 }
  0x4e   :  { %vm331_vm0 = vcmp.lt.s32.totalorder %v311_v12, 2  ;;  %vm332_vm1 = vcmp.lt.s32.totalorder %v311_v12, 3  ;;  %v339_v42 = vsel %vm333_vm14, %v326_v31, 920167782  ;;  %vm94_vm2 = vcmp.lt.s32.totalorder %v2064_v13, 0 }
  0x4f   :  { %vm1802_vm15 = vcmp.lt.s32.totalorder %v1801_v33, 0  ;;  %v2223_v20 = vsub.s32 %v255_v48, %v258_v34  ;;  %v334_v45 = vsel %vm330_vm13, %v314_v17, %v317_v25  ;;  %v338_v46 = vsel %vm330_vm13, %v317_v25, %v320_v55 }
  0x50   :  { %v163_v50 = vsel %vm1802_vm15, 0, %v1801_v33  ;;  %v336_v60 = vsel %vm332_vm1, %v320_v55, %v335_v39  ;;  %v340_v54 = vsel %vm332_vm1, %v323_v30, %v339_v42  ;;  %v342_v3 = vsel %vm330_vm13, %v320_v55, %v323_v30 }
  0x51   :  { %v164_v56 = vsub.s32 32, %v163_v50  ;;  %v165_v58 = vshll.u32 %v2183_v2, %v163_v50  ;;  %v168_v49 = vsub.s32 4294967266, %v163_v50  ;;  %v261_v43 = vsub.s32 0, %v2223_v20 }
  0x52   :  { %v343_v47 = vsel %vm333_vm14, %v329_v37, 1326507024  ;;  %vm197_vm3 = vcmp.lt.s32.totalorder %v2071_v22, 0  ;;  %vm2237_vm4 = vcmp.le.f32.partialorder %v92_v18, 0.7853982  ;;  %v178_v52 = vsub.s32 4, %v2162_v38 }
  0x53   :  { %v166_v48 = vshrl.u32 %v148_v32, %v164_v56  ;;  %v169_v4 = vadd.s32 127, %v168_v49  ;;  %v344_v53 = vsel %vm332_vm1, %v326_v31, %v343_v47  ;;  %v1804_v5 = vmin.u32 %v261_v43, %v2223_v20 }
  0x54   :  { %v341_v6 = vsel %vm331_vm0, %v338_v46, %v340_v54  ;;  %v2246_v7 = vand.u32 8388607, %v401_v15  ;;  %v337_v17 = vsel %vm331_vm0, %v334_v45, %v336_v60  ;;  %v345_v19 = vsel %vm331_vm0, %v342_v3, %v344_v53 }
  0x55   :  { %v167_v11 = vor.u32 %v166_v48, %v165_v58  ;;  %v170_v16 = vshll.u32 %v169_v4, 23  ;;  %v263_v18 = vclz %v1804_v5  ;;  %v1811_v25 = vadd.s32 4294967169, %v405_v41 }
  0x56   :  { %v2251_v21 = vmul.u32.u64.low %v2207_v14, %v345_v19  ;;  %v2252_v24 = vmul.u32.u64.high %v2207_v14, %v345_v19, %v2251_v21  ;;  %v2255_v55 = vmul.u32.u64.low %v2207_v14, %v341_v6  ;;  %v2256_v30 = vmul.u32.u64.high %v2207_v14, %v341_v6, %v2255_v55 }
  0x57   :  { %v171_v26 = vor.u32 4788187, %v170_v16  ;;  %v174_v28 = vcvt.s32.f32 %v167_v11  ;;  %vm2261_vm5 = vcmp.le.f32.partialorder %v195_v27, 0.7853982  ;;  %v1805_v12 = vadd.s32 4294967294, %v263_v18 }
  0x58   :  { %v281_v32 = vsub.s32 4, %v2215_v29  ;;  %v411_v33 = vadd.s32 1, %v1811_v25  ;;  %v179_v37 = vsel %vm94_vm2, %v178_v52, %v2162_v38  ;;  %v251_v39 = vadd.s32 %v2158_v35, %v2166_v40 }
  0x59   :  { %v172_v34 = vand.u32 2147483647, %v171_v26  ;;  %v409_v41 = vor.u32 8388608, %v2246_v7  ;;  %vm1806_vm6 = vcmp.lt.s32.totalorder %v1805_v12, 0  ;;  %v353_v27 = vmul.u32 %v2207_v14, %v337_v17 }
  0x5a   :  { %vm355_vm7 = vc.u32 %v2252_v24, %v2255_v55  ;;  %vm412_vm8 = vcmp.gt.s32.totalorder %v411_v33, 0  ;;  %v266_v50 = vsel %vm1806_vm6, 0, %v1805_v12  ;;  %v356_v45 = vadd.s32 1, %v2256_v30 }
  0x5b   :  { %v175_v42 = vmul.f32 %v174_v28, %v172_v34  ;;  %v413_v46 = vsel %vm412_vm8, %v411_v33, 0  ;;  %v267_v56 = vsub.s32 32, %v266_v50  ;;  %v268_v38 = vshll.u32 %v2223_v20, %v266_v50 }
  0x5c   :  { %v271_v58 = vsub.s32 4294967266, %v266_v50  ;;  %v282_v35 = vsel %vm197_vm3, %v281_v32, %v2215_v29  ;;  %v2282_v14 = vsel %vm2237_vm4, 0, %v179_v37  ;;  %v357_v49 = vsel %vm355_vm7, %v356_v45, %v2256_v30 }
  0x5d   :  { %v176_v40 = vxor.u32 2147483648, %v175_v42  ;;  %v415_v60 = vand.u32 31, %v413_v46  ;;  %v2286_v43 = vand.u32 3, %v2282_v14  ;;  %v269_v54 = vshrl.u32 %v251_v39, %v267_v56 }
  0x5e   :  { %v272_v3 = vadd.s32 127, %v271_v58  ;;  %v358_v47 = vadd.s32 %v357_v49, %v353_v27  ;;  %v2292_v29 = vsel %vm2261_vm5, 0, %v282_v35  ;;  %v414_v21 = vshrl.u32 %v413_v46, 5 }
  0x5f   :  { %v177_v20 = vsel %vm94_vm2, %v176_v40, %v175_v42  ;;  %v416_v48 = vsub.s32 32, %v415_v60  ;;  %v418_v4 = vshll.u32 %v2013_v57, %v415_v60  ;;  %v270_v52 = vor.u32 %v269_v54, %v268_v38 }
  0x60   :  { %v180_v53 = vsel %vm2237_vm4, %v2064_v13, %v177_v20  ;;  %v273_v5 = vshll.u32 %v272_v3, 23  ;;  %v359_v6 = vadd.s32 536870912, %v358_v47  ;;  %v421_v11 = vshll.u32 %v2014_v59, %v415_v60 }
  0x61   :  { %1906 = vcosq.f32 %v180_v53  ;;  %v419_v7 = vshrl.u32 %v2014_v59, %v416_v48  ;;  %v422_v16 = vshrl.u32 %v2015_v61, %v416_v48  ;;  %v277_v19 = vcvt.s32.f32 %v270_v52 }
  0x62   :  { %1908 = vsinq.f32 %v180_v53  ;;  %v274_v17 = vor.u32 4788187, %v273_v5  ;;  %v2301_v18 = vshrl.u32 %v359_v6, 30  ;;  %vm190_vm9 = vcmp.eq.s32.totalorder %v2286_v43, 2 }
  0x63   :  { %v2305_v2 = vand.u32 3, %v2292_v29  ;;  %v424_v25 = vshll.u32 %v2015_v61, %v415_v60  ;;  %v425_v26 = vshrl.u32 %v2016_v63, %v416_v48  ;;  %vm187_vm10 = vcmp.eq.s32.totalorder %v2286_v43, 0 }
  0x64   :  { %v275_v28 = vand.u32 2147483647, %v274_v17  ;;  %v361_v30 = vshll.u32 %v2301_v18, 30  ;;  %v427_v12 = vshll.u32 %v2016_v63, %v415_v60  ;;  %v2312_v32 = vshll.u32 %v409_v41, 8 }
  0x65   :  { %vm186_vm11 = vcmp.lt.s32.totalorder %v2286_v43, 2  ;;  %v420_v33 = vor.u32 %v419_v7, %v418_v4  ;;  %v423_v34 = vor.u32 %v422_v16, %v421_v11  ;;  %v428_v37 = vshrl.u32 %v2017_v1, %v416_v48 }
  0x66   :  { %v507_v39 = vand.u32 2139095040, %v2194_v8  ;;  %vm184_vm12 = vweird.f32 %v2064_v13  ;;  %v278_v27 = vmul.f32 %v277_v19, %v275_v28  ;;  %v2318_v42 = vsub.s32 %v358_v47, %v361_v30 }
  0x67   :  { %v430_v50 = vshll.u32 %v2017_v1, %v415_v60  ;;  %v431_v45 = vshrl.u32 %v2018_v10, %v416_v48  ;;  %v417_v41 = vshrl.u32 %v2013_v57, %v416_v48  ;;  %v426_v46 = vor.u32 %v425_v26, %v424_v25 }
  0x68   :  { %v429_v56 = vor.u32 %v428_v37, %v427_v12  ;;  %vm433_vm13 = vcmp.lt.s32.totalorder %v414_v21, 1  ;;  %v279_v38 = vxor.u32 2147483648, %v278_v27  ;;  %v364_v58 = vsub.s32 0, %v2318_v42 }
  0x69   :  { %vm435_vm14 = vcmp.lt.s32.totalorder %v414_v21, 3  ;;  %vm436_vm15 = vcmp.lt.s32.totalorder %v414_v21, 4  ;;  %v354_v35 = vadd.s32 %v2255_v55, %v2252_v24  ;;  %vm434_vm0 = vcmp.lt.s32.totalorder %v414_v21, 2 }
  0x6a   :  { %v438_v40 = vsel %vm436_vm15, %v426_v46, 2102212464  ;;  %v442_v49 = vsel %vm436_vm15, %v429_v56, 920167782  ;;  %v280_v60 = vsel %vm197_vm3, %v279_v38, %v278_v27  ;;  %v1808_v54 = vmin.u32 %v364_v58, %v2318_v42 }
  0x6b   :  { %v432_v3 = vor.u32 %v431_v45, %v430_v50  ;;  %v441_v47 = vsel %vm433_vm13, %v420_v33, %v423_v34  ;;  %v2332_v20 = vpop.eup %1906  ;;  %v283_v48 = vsel %vm2261_vm5, %v2071_v22, %v280_v60  ;;  %v437_v24 = vsel %vm433_vm13, %v417_v41, %v420_v33 }
  0x6c   :  { %v439_v55 = vsel %vm435_vm14, %v423_v34, %v438_v40  ;;  %v443_v4 = vsel %vm435_vm14, %v426_v46, %v442_v49  ;;  %v2340_v53 = vpop.eup %1908  ;;  %v191_v52 = vxor.u32 2147483648, %v2332_v20  ;;  %1910 = vcosq.f32 %v283_v48 }
  0x6d   :  { %v366_v5 = vclz %v1808_v54  ;;  %v508_v6 = vshrl.u32 %v507_v39, 23  ;;  %v188_v7 = vxor.u32 2147483648, %v2340_v53  ;;  %1912 = vsinq.f32 %v283_v48 }
  0x6e   :  { %v444_v11 = vsel %vm434_vm0, %v441_v47, %v443_v4  ;;  %v445_v31 = vsel %vm433_vm13, %v423_v34, %v426_v46  ;;  %v192_v16 = vsel %vm190_vm9, %v191_v52, %v2340_v53  ;;  %v440_v19 = vsel %vm434_vm0, %v437_v24, %v439_v55 }
  0x6f   :  { %v1809_v17 = vadd.s32 4294967294, %v366_v5  ;;  %v446_v25 = vsel %vm436_vm15, %v432_v3, 1326507024  ;;  %v189_v26 = vsel %vm187_vm10, %v2332_v20, %v188_v7  ;;  %v1815_v37 = vadd.s32 4294967169, %v508_v6 }
  0x70   :  { %v447_v28 = vsel %vm435_vm14, %v429_v56, %v446_v25  ;;  %v2360_v30 = vmul.u32.u64.low %v2312_v32, %v444_v11  ;;  %v2361_v12 = vmul.u32.u64.high %v2312_v32, %v444_v11, %v2360_v30  ;;  %v193_v33 = vsel %vm186_vm11, %v189_v26, %v192_v16 }
  0x71   :  { %vm1810_vm1 = vcmp.lt.s32.totalorder %v1809_v17, 0  ;;  %v448_v34 = vsel %vm434_vm0, %v445_v31, %v447_v28  ;;  %v194_v39 = vsel %vm184_vm12, nan, %v193_v33  ;;  %vm287_vm2 = vweird.f32 %v2071_v22 }
  0x72   :  { %v369_v27 = vsel %vm1810_vm1, 0, %v1809_v17  ;;  %v2370_v50 = vmul.u32.u64.low %v2312_v32, %v448_v34  ;;  %v2371_v45 = vmul.u32.u64.high %v2312_v32, %v448_v34, %v2370_v50  ;;  %916 = vst [vmem:[#allocation5] sm:$0xff] %v194_v39  ;;  %vm300_vm3 = vcmp.lt.s32.totalorder %v2074_v23, 0 }
  0x73   :  { %v370_v41 = vsub.s32 32, %v369_v27  ;;  %v371_v46 = vshll.u32 %v2318_v42, %v369_v27  ;;  %v374_v43 = vsub.s32 4294967266, %v369_v27  ;;  %v456_v21 = vmul.u32 %v2312_v32, %v440_v19 }
  0x74   :  { %v459_v56 = vadd.s32 1, %v2361_v12  ;;  %v514_v38 = vadd.s32 1, %v1815_v37  ;;  %vm289_vm4 = vcmp.lt.s32.totalorder %v2305_v2, 2  ;;  %v504_v49 = vand.u32 2147483647, %v2194_v8 }
  0x75   :  { %v372_v58 = vshrl.u32 %v354_v35, %v370_v41  ;;  %v375_v40 = vadd.s32 127, %v374_v43  ;;  %vm293_vm5 = vcmp.eq.s32.totalorder %v2305_v2, 2  ;;  %v384_v60 = vsub.s32 4, %v2301_v18 }
  0x76   :  { %vm458_vm6 = vc.u32 %v2371_v45, %v2360_v30  ;;  %vm515_vm7 = vcmp.gt.s32.totalorder %v514_v38, 0  ;;  %v2384_v42 = vpop.eup %1910  ;;  %vm290_vm8 = vcmp.eq.s32.totalorder %v2305_v2, 0  ;;  %v511_v11 = vand.u32 8388607, %v504_v49 }
  0x77   :  { %v373_v32 = vor.u32 %v372_v58, %v371_v46  ;;  %v376_v54 = vshll.u32 %v375_v40, 23  ;;  %v460_v3 = vsel %vm458_vm6, %v459_v56, %v2361_v12  ;;  %v516_v47 = vsel %vm515_vm7, %v514_v38, 0  ;;  %v2387_v48 = vpop.eup %1912 }
  0x78   :  { %v294_v35 = vxor.u32 2147483648, %v2384_v42  ;;  %v461_v24 = vadd.s32 %v460_v3, %v456_v21  ;;  %v518_v55 = vand.u32 31, %v516_v47  ;;  %v291_v4 = vxor.u32 2147483648, %v2387_v48 }
  0x79   :  { %v377_v5 = vor.u32 4788187, %v376_v54  ;;  %v380_v6 = vcvt.s32.f32 %v373_v32  ;;  %v385_v16 = vsel %vm300_vm3, %v384_v60, %v2301_v18  ;;  %vm2419_vm9 = vcmp.le.f32.partialorder %v298_v51, 0.7853982 }
  0x7a   :  { %v295_v31 = vsel %vm293_vm5, %v294_v35, %v2387_v48  ;;  %v462_v17 = vadd.s32 536870912, %v461_v24  ;;  %v519_v19 = vsub.s32 32, %v518_v55  ;;  %v292_v25 = vsel %vm290_vm8, %v2384_v42, %v291_v4 }
  0x7b   :  { %v378_v26 = vand.u32 2147483647, %v377_v5  ;;  %v521_v28 = vshll.u32 %v2013_v57, %v518_v55  ;;  %v524_v12 = vshll.u32 %v2014_v59, %v518_v55  ;;  %v296_v33 = vsel %vm289_vm4, %v292_v25, %v295_v31 }
  0x7c   :  { %v2409_v34 = vshrl.u32 %v462_v17, 30  ;;  %v522_v37 = vshrl.u32 %v2014_v59, %v519_v19  ;;  %v527_v18 = vshll.u32 %v2015_v61, %v518_v55  ;;  %v297_v39 = vsel %vm287_vm2, nan, %v296_v33 }
  0x7d   :  { %v381_v27 = vmul.f32 %v380_v6, %v378_v26  ;;  %v525_v50 = vshrl.u32 %v2015_v61, %v519_v19  ;;  %v528_v41 = vshrl.u32 %v2016_v63, %v519_v19  ;;  %917 = vst [vmem:[#allocation5 + $0x8] sm:$0xff] %v297_v39  ;;  %v517_v43 = vshrl.u32 %v516_v47, 5 }
  0x7e   :  { %v464_v46 = vshll.u32 %v2409_v34, 30  ;;  %v530_v21 = vshll.u32 %v2016_v63, %v518_v55  ;;  %v2427_v38 = vsel %vm2419_vm9, 0, %v385_v16  ;;  %v512_v58 = vor.u32 8388608, %v511_v11 }
  0x7f   :  { %v382_v56 = vxor.u32 2147483648, %v381_v27  ;;  %v531_v40 = vshrl.u32 %v2017_v1, %v519_v19  ;;  %v520_v51 = vshrl.u32 %v2013_v57, %v519_v19  ;;  %v533_v32 = vshll.u32 %v2017_v1, %v518_v55 }
  0x80   :  { %v2430_v60 = vsub.s32 %v461_v24, %v464_v46  ;;  %v534_v54 = vshrl.u32 %v2018_v10, %v519_v19  ;;  %v523_v47 = vor.u32 %v522_v37, %v521_v28  ;;  %v526_v5 = vor.u32 %v525_v50, %v524_v12 }
  0x81   :  { %v383_v3 = vsel %vm300_vm3, %v382_v56, %v381_v27  ;;  %v529_v6 = vor.u32 %v528_v41, %v527_v18  ;;  %v532_v24 = vor.u32 %v531_v40, %v530_v21  ;;  %vm536_vm10 = vcmp.lt.s32.totalorder %v517_v43, 1 }
  0x82   :  { %v386_v11 = vsel %vm2419_vm9, %v2074_v23, %v383_v3  ;;  %v467_v31 = vsub.s32 0, %v2430_v60  ;;  %v535_v16 = vor.u32 %v534_v54, %v533_v32  ;;  %vm539_vm11 = vcmp.lt.s32.totalorder %v517_v43, 4 }
  0x83   :  { %1914 = vcosq.f32 %v386_v11  ;;  %v610_v55 = vand.u32 2139095040, %v2197_v36  ;;  %v391_v17 = vand.u32 3, %v2427_v38  ;;  %vm538_vm13 = vcmp.lt.s32.totalorder %v517_v43, 3 }
  0x84   :  { %1916 = vsinq.f32 %v386_v11  ;;  %v1812_v19 = vmin.u32 %v467_v31, %v2430_v60  ;;  %vm537_vm14 = vcmp.lt.s32.totalorder %v517_v43, 2  ;;  %v541_v25 = vsel %vm539_vm11, %v529_v6, 2102212464 }
  0x85   :  { %v544_v26 = vsel %vm536_vm10, %v523_v47, %v526_v5  ;;  %v552_v28 = vshll.u32 %v512_v58, 8  ;;  %v540_v33 = vsel %vm536_vm10, %v520_v51, %v523_v47  ;;  %v545_v37 = vsel %vm539_vm11, %v532_v24, 920167782 }
  0x86   :  { %v469_v12 = vclz %v1812_v19  ;;  %v548_v18 = vsel %vm536_vm10, %v526_v5, %v529_v6  ;;  %v542_v39 = vsel %vm538_vm13, %v526_v5, %v541_v25  ;;  %v546_v27 = vsel %vm538_vm13, %v529_v6, %v545_v37 }
  0x87   :  { %v549_v50 = vsel %vm539_vm11, %v535_v16, 1326507024  ;;  %v611_v41 = vshrl.u32 %v610_v55, 23  ;;  %v457_v2 = vadd.s32 %v2360_v30, %v2371_v45  ;;  %v547_v21 = vsel %vm537_vm14, %v544_v26, %v546_v27 }
  0x88   :  { %v1813_v46 = vadd.s32 4294967294, %v469_v12  ;;  %v550_v56 = vsel %vm538_vm13, %v532_v24, %v549_v50  ;;  %v2457_v40 = vmul.u32.u64.low %v552_v28, %v547_v21  ;;  %v2458_v51 = vmul.u32.u64.high %v552_v28, %v547_v21, %v2457_v40 }
  0x89   :  { %v551_v58 = vsel %vm537_vm14, %v548_v18, %v550_v56  ;;  %v1819_v32 = vadd.s32 4294967169, %v611_v41  ;;  %v543_v54 = vsel %vm537_vm14, %v540_v33, %v542_v39  ;;  %vm390_vm0 = vweird.f32 %v2074_v23 }
  0x8a   :  { %vm1814_vm15 = vcmp.lt.s32.totalorder %v1813_v46, 0  ;;  %v2462_v3 = vmul.u32.u64.low %v552_v28, %v551_v58  ;;  %v2463_v47 = vmul.u32.u64.high %v552_v28, %v551_v58, %v2462_v3  ;;  %v607_v45 = vand.u32 2147483647, %v2197_v36 }
  0x8b   :  { %v472_v30 = vsel %vm1814_vm15, 0, %v1813_v46  ;;  %v617_v5 = vadd.s32 1, %v1819_v32  ;;  %vm392_vm1 = vcmp.lt.s32.totalorder %v391_v17, 2  ;;  %vm396_vm3 = vcmp.eq.s32.totalorder %v391_v17, 2 }
  0x8c   :  { %v473_v6 = vsub.s32 32, %v472_v30  ;;  %v474_v11 = vshll.u32 %v2430_v60, %v472_v30  ;;  %v477_v31 = vsub.s32 4294967266, %v472_v30  ;;  %v559_v16 = vmul.u32 %v552_v28, %v543_v54 }
  0x8d   :  { %v2468_v24 = vpop.eup %1914  ;;  %v562_v43 = vadd.s32 1, %v2458_v51  ;;  %vm618_vm4 = vcmp.gt.s32.totalorder %v617_v5, 0  ;;  %vm393_vm5 = vcmp.eq.s32.totalorder %v391_v17, 0  ;;  %vm561_vm6 = vc.u32 %v2463_v47, %v2457_v40 }
  0x8e   :  { %v2471_v55 = vpop.eup %1916  ;;  %v2918_v19 = vxor.u32 2147483648, %v2468_v24  ;;  %v475_v25 = vshrl.u32 %v457_v2, %v473_v6  ;;  %v478_v26 = vadd.s32 127, %v477_v31  ;;  %v614_v60 = vand.u32 8388607, %v607_v45 }
  0x8f   :  { %v2919_v12 = vxor.u32 2147483648, %v2471_v55  ;;  %v619_v33 = vsel %vm618_vm4, %v617_v5, 0  ;;  %v563_v39 = vsel %vm561_vm6, %v562_v43, %v2458_v51  ;;  %vm403_vm7 = vcmp.lt.s32.totalorder %v2189_v44, 0 }
  0x90   :  { %v398_v28 = vsel %vm396_vm3, %v2918_v19, %v2471_v55  ;;  %v476_v37 = vor.u32 %v475_v25, %v474_v11  ;;  %v479_v18 = vshll.u32 %v478_v26, 23  ;;  %v564_v50 = vadd.s32 %v563_v39, %v559_v16 }
  0x91   :  { %v395_v27 = vsel %vm393_vm5, %v2468_v24, %v2919_v12  ;;  %v621_v41 = vand.u32 31, %v619_v33  ;;  %v487_v56 = vsub.s32 4, %v2409_v34  ;;  %v615_v54 = vor.u32 8388608, %v614_v60 }
  0x92   :  { %v399_v2 = vsel %vm392_vm1, %v395_v27, %v398_v28  ;;  %v480_v46 = vor.u32 4788187, %v479_v18  ;;  %v483_v21 = vcvt.s32.f32 %v476_v37  ;;  %v565_v32 = vadd.s32 536870912, %v564_v50 }
  0x93   :  { %v400_v58 = vsel %vm390_vm0, nan, %v399_v2  ;;  %v622_v51 = vsub.s32 32, %v621_v41  ;;  %v620_v30 = vshrl.u32 %v619_v33, 5  ;;  %v624_v5 = vshll.u32 %v2013_v57, %v621_v41 }
  0x94   :  { %918 = vst [vmem:[#allocation5 + $0x10] sm:$0xff] %v400_v58  ;;  %v481_v3 = vand.u32 2147483647, %v480_v46  ;;  %v627_v6 = vshll.u32 %v2014_v59, %v621_v41  ;;  %v2493_v11 = vshrl.u32 %v565_v32, 30  ;;  %v630_v16 = vshll.u32 %v2015_v61, %v621_v41 }
  0x95   :  { %v625_v17 = vshrl.u32 %v2014_v59, %v622_v51  ;;  %v628_v31 = vshrl.u32 %v2015_v61, %v622_v51  ;;  %v631_v25 = vshrl.u32 %v2016_v63, %v622_v51  ;;  %v633_v26 = vshll.u32 %v2016_v63, %v621_v41 }
  0x96   :  { %v484_v43 = vmul.f32 %v483_v21, %v481_v3  ;;  %v634_v60 = vshrl.u32 %v2017_v1, %v622_v51  ;;  %vm2503_vm8 = vcmp.le.f32.partialorder %v401_v15, 0.7853982  ;;  %v488_v28 = vsel %vm403_vm7, %v487_v56, %v2409_v34 }
  0x97   :  { %v567_v37 = vshll.u32 %v2493_v11, 30  ;;  %v636_v18 = vshll.u32 %v2017_v1, %v621_v41  ;;  %v637_v27 = vshrl.u32 %v2018_v10, %v622_v51  ;;  %v2513_v2 = vshll.u32 %v615_v54, 8 }
  0x98   :  { %v485_v39 = vxor.u32 2147483648, %v484_v43  ;;  %v2517_v46 = vmul.f32 %v2060_v9, %v2177_v62  ;;  %v623_v21 = vshrl.u32 %v2013_v57, %v622_v51  ;;  %v626_v58 = vor.u32 %v625_v17, %v624_v5 }
  0x99   :  { %v2519_v15 = vsub.s32 %v564_v50, %v567_v37  ;;  %v629_v32 = vor.u32 %v628_v31, %v627_v6  ;;  %v632_v56 = vor.u32 %v631_v25, %v630_v16  ;;  %v635_v41 = vor.u32 %v634_v60, %v633_v26 }
  0x9a   :  { %v486_v34 = vsel %vm403_vm7, %v485_v39, %v484_v43  ;;  %vm639_vm9 = vcmp.lt.s32.totalorder %v620_v30, 1  ;;  %v638_v9 = vor.u32 %v637_v27, %v636_v18  ;;  %vm642_vm10 = vcmp.lt.s32.totalorder %v620_v30, 4 }
  0x9b   :  { %v489_v54 = vsel %vm2503_vm8, %v2189_v44, %v486_v34  ;;  %v570_v3 = vsub.s32 0, %v2519_v15  ;;  %vm640_vm11 = vcmp.lt.s32.totalorder %v620_v30, 2  ;;  %vm641_vm13 = vcmp.lt.s32.totalorder %v620_v30, 3 }
  0x9c   :  { %1918 = vcosq.f32 %v489_v54  ;;  %v644_v62 = vsel %vm642_vm10, %v632_v56, 2102212464  ;;  %vm506_vm14 = vcmp.lt.s32.totalorder %v2194_v8, 0  ;;  %v643_v51 = vsel %vm639_vm9, %v623_v21, %v626_v58 }
  0x9d   :  { %1920 = vsinq.f32 %v489_v54  ;;  %v1816_v50 = vmin.u32 %v570_v3, %v2519_v15  ;;  %v647_v5 = vsel %vm639_vm9, %v626_v58, %v629_v32  ;;  %v2535_v6 = vsel %vm2503_vm8, 0, %v488_v28 }
  0x9e   :  { %v645_v17 = vsel %vm641_vm13, %v629_v32, %v644_v62  ;;  %v648_v31 = vsel %vm642_vm10, %v635_v41, 920167782  ;;  %v651_v16 = vsel %vm639_vm9, %v629_v32, %v632_v56  ;;  %v494_v43 = vand.u32 3, %v2535_v6 }
  0x9f   :  { %v572_v25 = vclz %v1816_v50  ;;  %v649_v26 = vsel %vm641_vm13, %v632_v56, %v648_v31  ;;  %v652_v60 = vsel %vm642_vm10, %v638_v9, 1326507024  ;;  %v646_v37 = vsel %vm640_vm11, %v643_v51, %v645_v17 }
  0xa0   :  { %v650_v18 = vsel %vm640_vm11, %v647_v5, %v649_v26  ;;  %v653_v33 = vsel %vm641_vm13, %v635_v41, %v652_v60  ;;  %v713_v28 = vand.u32 2139095040, %v2517_v46  ;;  %vm493_vm15 = vweird.f32 %v2189_v44 }
  0xa1   :  { %vm2550_vm1 = vcmp.le.f32.partialorder %v504_v49, 0.7853982  ;;  %v1817_v27 = vadd.s32 4294967294, %v572_v25  ;;  %v654_v21 = vsel %vm640_vm11, %v651_v16, %v653_v33  ;;  %v590_v34 = vsub.s32 4, %v2493_v11 }
  0xa2   :  { %v2556_v58 = vmul.u32.u64.low %v2513_v2, %v650_v18  ;;  %v2557_v32 = vmul.u32.u64.high %v2513_v2, %v650_v18, %v2556_v58  ;;  %v2562_v56 = vmul.u32.u64.low %v2513_v2, %v654_v21  ;;  %v2563_v41 = vmul.u32.u64.high %v2513_v2, %v654_v21, %v2562_v56 }
  0xa3   :  { %v714_v54 = vshrl.u32 %v713_v28, 23  ;;  %vm495_vm3 = vcmp.lt.s32.totalorder %v494_v43, 2  ;;  %vm496_vm4 = vcmp.eq.s32.totalorder %v494_v43, 0  ;;  %v560_v49 = vadd.s32 %v2457_v40, %v2463_v47 }
  0xa4   :  { %vm1818_vm5 = vcmp.lt.s32.totalorder %v1817_v27, 0  ;;  %v662_v3 = vmul.u32 %v2513_v2, %v646_v37  ;;  %v2920_v9 = vand.u32 2147483647, %v2517_v46  ;;  %v665_v17 = vadd.s32 1, %v2557_v32 }
  0xa5   :  { %v575_v30 = vsel %vm1818_vm5, 0, %v1817_v27  ;;  %v1823_v62 = vadd.s32 4294967169, %v714_v54  ;;  %vm499_vm6 = vcmp.eq.s32.totalorder %v494_v43, 2  ;;  %v591_v40 = vsel %vm506_vm14, %v590_v34, %v2493_v11 }
  0xa6   :  { %v576_v50 = vsub.s32 32, %v575_v30  ;;  %v577_v51 = vshll.u32 %v2519_v15, %v575_v30  ;;  %v580_v5 = vsub.s32 4294967266, %v575_v30  ;;  %v2571_v31 = vpop.eup %1918  ;;  %vm664_vm7 = vc.u32 %v2563_v41, %v2556_v58 }
  0xa7   :  { %v720_v47 = vadd.s32 1, %v1823_v62  ;;  %v2578_v2 = vpop.eup %1920  ;;  %v2916_v16 = vxor.u32 2147483648, %v2571_v31  ;;  %v666_v26 = vsel %vm664_vm7, %v665_v17, %v2557_v32  ;;  %v717_v18 = vand.u32 8388607, %v2920_v9 }
  0xa8   :  { %v578_v25 = vshrl.u32 %v560_v49, %v576_v50  ;;  %v581_v15 = vadd.s32 127, %v580_v5  ;;  %v2917_v60 = vxor.u32 2147483648, %v2578_v2  ;;  %v667_v37 = vadd.s32 %v666_v26, %v662_v3  ;;  %v1938_v5 = vld [vmem:[%s2913_s1] ss:$0 sm:$0xff]  ;;  %s2019_s1 = smov [#allocation5]  }
  0xa9   :  { %vm721_vm8 = vcmp.gt.s32.totalorder %v720_v47, 0  ;;  %v501_v11 = vsel %vm499_vm6, %v2916_v16, %v2578_v2  ;;  %v2594_v32 = vsel %vm2550_vm1, 0, %v591_v40  ;;  %v76_v17 = vadd.f32 %v1938_v5, %v2181_v0  ;;  %s1769_s28 = sshll.u32 %s2019_s1, 4  ;;  %s1770_s28 = int_to_ptr.vmem [resolvable:$true] %s1769_s28 }
  0xaa   :  { %v579_v33 = vor.u32 %v578_v25, %v577_v51  ;;  %v582_v28 = vshll.u32 %v581_v15, 23  ;;  %v722_v27 = vsel %vm721_vm8, %v720_v47, 0  ;;  %v498_v21 = vsel %vm496_vm4, %v2571_v31, %v2917_v60  ;;  %s1962_s4 = scalar_lea.vmem %s1770_s28, 1024  ;;  %p1967_p9 = scmp.lt.s32.totalorder %s1770_s28, %s1770_s28 }
  0xab   :  { %v668_v34 = vadd.s32 536870912, %v667_v37  ;;  %v724_v56 = vand.u32 31, %v722_v27  ;;  %v502_v54 = vsel %vm495_vm3, %v498_v21, %v501_v11  ;;  %v2598_v3 = vand.u32 3, %v2594_v32  ;;  %p1963_p8 = scmp.ne.s32.totalorder %s1770_s28, %s1962_s4  ;;  %p1968_p10 = scmp.lt.s32.totalorder %s1962_s4, %s1962_s4 }
  0xac   :  { %v583_v49 = vor.u32 4788187, %v582_v28  ;;  %v586_v30 = vcvt.s32.f32 %v579_v33  ;;  %v503_v62 = vsel %vm493_vm15, nan, %v502_v54  ;;  %v718_v40 = vor.u32 8388608, %v717_v18 }
  0xad   :  { %v2602_v50 = vshrl.u32 %v668_v34, 30  ;;  %v725_v51 = vsub.s32 32, %v724_v56  ;;  %919 = vst [vmem:[#allocation5 + $0x18] sm:$0xff] %v503_v62  ;;  %v727_v47 = vshll.u32 %v2013_v57, %v724_v56  ;;  %v730_v25 = vshll.u32 %v2014_v59, %v724_v56  ;;  %p1969_p11 = por %p1968_p10, %p1967_p9 }
  0xae   :  { %v584_v43 = vand.u32 2147483647, %v583_v49  ;;  %v733_v11 = vshll.u32 %v2015_v61, %v724_v56  ;;  %v736_v33 = vshll.u32 %v2016_v63, %v724_v56  ;;  %v723_v54 = vshrl.u32 %v722_v27, 5 }
  0xaf   :  { %v670_v15 = vshll.u32 %v2602_v50, 30  ;;  %v728_v26 = vshrl.u32 %v2014_v59, %v725_v51  ;;  %v731_v21 = vshrl.u32 %v2015_v61, %v725_v51  ;;  %v734_v0 = vshrl.u32 %v2016_v63, %v725_v51  ;;  %p1970_p12 = pnand %p1969_p11, %p1963_p8 }
  0xb0   :  { %v587_v28 = vmul.f32 %v586_v30, %v584_v43  ;;  %v737_v34 = vshrl.u32 %v2017_v1, %v725_v51  ;;  %v1017_v49 = vadd.s32 3, %v2282_v14  ;;  %v2621_v62 = vadd.s32 3, %v2292_v29  ;;  %v1939_v30 = vld [vmem:[#allocation2] ss:$0 sm:$0xff] }
  0xb1   :  { %v2617_v18 = vsub.s32 %v667_v37, %v670_v15  ;;  %v739_v16 = vshll.u32 %v2017_v1, %v724_v56  ;;  %v2624_v60 = vshll.u32 %v718_v40, 8  ;;  %v2626_v43 = vmul.f32 %v1939_v30, %v76_v17 }
  0xb2   :  { %v588_v5 = vxor.u32 2147483648, %v587_v28  ;;  %v726_v12 = vshrl.u32 %v2013_v57, %v725_v51  ;;  %v729_v37 = vor.u32 %v728_v26, %v727_v47  ;;  %v740_v27 = vshrl.u32 %v2018_v10, %v725_v51 }
  0xb3   :  { %v673_v19 = vsub.s32 0, %v2617_v18  ;;  %v732_v29 = vor.u32 %v731_v21, %v730_v25  ;;  %v735_v15 = vor.u32 %v734_v0, %v733_v11  ;;  %v738_v9 = vor.u32 %v737_v34, %v736_v33 }
  0xb4   :  { %v589_v14 = vsel %vm506_vm14, %v588_v5, %v587_v28  ;;  %vm742_vm9 = vcmp.lt.s32.totalorder %v723_v54, 1  ;;  %vm743_vm10 = vcmp.lt.s32.totalorder %v723_v54, 2  ;;  %v741_v40 = vor.u32 %v740_v27, %v739_v16 }
  0xb5   :  { %v592_v56 = vsel %vm2550_vm1, %v2194_v8, %v589_v14  ;;  %v1820_v17 = vmin.u32 %v673_v19, %v2617_v18  ;;  %vm744_vm11 = vcmp.lt.s32.totalorder %v723_v54, 3  ;;  %vm745_vm13 = vcmp.lt.s32.totalorder %v723_v54, 4 }
  0xb6   :  { %1922 = vcosq.f32 %v592_v56  ;;  %vm609_vm3 = vcmp.lt.s32.totalorder %v2197_v36, 0  ;;  %v746_v47 = vsel %vm742_vm9, %v726_v12, %v729_v37  ;;  %v747_v25 = vsel %vm745_vm13, %v735_v15, 2102212464 }
  0xb7   :  { %1924 = vsinq.f32 %v592_v56  ;;  %v675_v51 = vclz %v1820_v17  ;;  %v748_v26 = vsel %vm744_vm11, %v732_v29, %v747_v25  ;;  %v750_v11 = vsel %vm742_vm9, %v729_v37, %v732_v29 }
  0xb8   :  { %v751_v33 = vsel %vm745_vm13, %v738_v9, 920167782  ;;  %v754_v39 = vsel %vm742_vm9, %v732_v29, %v735_v15  ;;  %v663_v19 = vadd.s32 %v2556_v58, %v2563_v41  ;;  %v755_v16 = vsel %vm745_vm13, %v741_v40, 1326507024 }
  0xb9   :  { %v1821_v28 = vadd.s32 4294967294, %v675_v51  ;;  %v752_v21 = vsel %vm744_vm11, %v735_v15, %v751_v33  ;;  %vm598_vm14 = vcmp.lt.s32.totalorder %v2598_v3, 2  ;;  %v749_v0 = vsel %vm743_vm10, %v746_v47, %v748_v26 }
  0xba   :  { %v753_v34 = vsel %vm743_vm10, %v750_v11, %v752_v21  ;;  %v756_v12 = vsel %vm744_vm11, %v738_v9, %v755_v16  ;;  %v813_v5 = vand.u32 2147483647, %v2626_v43  ;;  %vm596_vm1 = vweird.f32 %v2194_v8 }
  0xbb   :  { %vm1822_vm4 = vcmp.lt.s32.totalorder %v1821_v28, 0  ;;  %v757_v30 = vsel %vm743_vm10, %v754_v39, %v756_v12  ;;  %v2650_v58 = vmul.u32.u64.low %v2624_v60, %v753_v34  ;;  %v2651_v41 = vmul.u32.u64.high %v2624_v60, %v753_v34, %v2650_v58 }
  0xbc   :  { %v678_v37 = vsel %vm1822_vm4, 0, %v1821_v28  ;;  %v693_v27 = vsub.s32 4, %v2602_v50  ;;  %v2655_v14 = vmul.u32.u64.low %v2624_v60, %v757_v30  ;;  %v2656_v29 = vmul.u32.u64.high %v2624_v60, %v757_v30, %v2655_v14 }
  0xbd   :  { %v679_v15 = vsub.s32 32, %v678_v37  ;;  %v680_v9 = vshll.u32 %v2617_v18, %v678_v37  ;;  %v683_v56 = vsub.s32 4294967266, %v678_v37  ;;  %v816_v17 = vand.u32 2139095040, %v2626_v43 }
  0xbe   :  { %vm599_vm5 = vcmp.eq.s32.totalorder %v2598_v3, 0  ;;  %vm602_vm6 = vcmp.eq.s32.totalorder %v2598_v3, 2  ;;  %v765_v54 = vmul.u32 %v2624_v60, %v749_v0  ;;  %v1018_v40 = vand.u32 3, %v1017_v49 }
  0xbf   :  { %v681_v51 = vshrl.u32 %v663_v19, %v679_v15  ;;  %v684_v47 = vadd.s32 127, %v683_v56  ;;  %v768_v25 = vadd.s32 1, %v2651_v41  ;;  %v817_v26 = vshrl.u32 %v816_v17, 23 }
  0xc0   :  { %v2664_v11 = vpop.eup %1922  ;;  %v694_v18 = vsel %vm609_vm3, %v693_v27, %v2602_v50  ;;  %vm767_vm7 = vc.u32 %v2656_v29, %v2650_v58  ;;  %v820_v33 = vand.u32 8388607, %v813_v5  ;;  %v2673_v39 = vand.u32 3, %v2621_v62 }
  0xc1   :  { %v2675_v60 = vpop.eup %1924  ;;  %v603_v49 = vxor.u32 2147483648, %v2664_v11  ;;  %v682_v19 = vor.u32 %v681_v51, %v680_v9  ;;  %v685_v28 = vshll.u32 %v684_v47, 23  ;;  %v769_v21 = vsel %vm767_vm7, %v768_v25, %v2651_v41 }
  0xc2   :  { %v600_v16 = vxor.u32 2147483648, %v2675_v60  ;;  %v770_v0 = vadd.s32 %v769_v21, %v765_v54  ;;  %v1827_v50 = vadd.s32 4294967169, %v817_v26  ;;  %vm1019_vm8 = vcmp.lt.s32.totalorder %v1018_v40, 2 }
  0xc3   :  { %v604_v62 = vsel %vm602_vm6, %v603_v49, %v2675_v60  ;;  %v686_v34 = vor.u32 4788187, %v685_v28  ;;  %v689_v12 = vcvt.s32.f32 %v682_v19  ;;  %vm1020_vm9 = vcmp.eq.s32.totalorder %v1018_v40, 0 }
  0xc4   :  { %v601_v30 = vsel %vm599_vm5, %v2664_v11, %v600_v16  ;;  %v771_v41 = vadd.s32 536870912, %v770_v0  ;;  %v823_v37 = vadd.s32 1, %v1827_v50  ;;  %v1022_v27 = vsel %vm1020_vm9, %v2332_v20, %v188_v7 }
  0xc5   :  { %v605_v14 = vsel %vm598_vm14, %v601_v30, %v604_v62  ;;  %v687_v15 = vand.u32 2147483647, %v686_v34  ;;  %v821_v9 = vor.u32 8388608, %v820_v33  ;;  %vm1023_vm10 = vcmp.eq.s32.totalorder %v1018_v40, 2 }
  0xc6   :  { %v606_v56 = vsel %vm596_vm1, nan, %v605_v14  ;;  %v2697_v17 = vshrl.u32 %v771_v41, 30  ;;  %vm824_vm11 = vcmp.gt.s32.totalorder %v823_v37, 0  ;;  %v1025_v54 = vsel %vm1023_vm10, %v191_v52, %v2340_v53 }
  0xc7   :  { %920 = vst [vmem:[#allocation5 + $0x20] sm:$0xff] %v606_v56  ;;  %vm2704_vm13 = vcmp.le.f32.partialorder %v607_v45, 0.7853982  ;;  %v690_v3 = vmul.f32 %v689_v12, %v687_v15  ;;  %v825_v51 = vsel %vm824_vm11, %v823_v37, 0  ;;  %v1026_v47 = vsel %vm1019_vm8, %v1022_v27, %v1025_v54 }
  0xc8   :  { %v2711_v25 = vsel %vm2704_vm13, 0, %v694_v18  ;;  %v773_v26 = vshll.u32 %v2697_v17, 30  ;;  %v827_v33 = vand.u32 31, %v825_v51  ;;  %v2718_v52 = vadd.s32 %v2650_v58, %v2656_v29 }
  0xc9   :  { %v691_v20 = vxor.u32 2147483648, %v690_v3  ;;  %v2715_v53 = vand.u32 3, %v2711_v25  ;;  %v1027_v45 = vsel %vm184_vm12, nan, %v1026_v47  ;;  %v2724_v28 = vshll.u32 %v821_v9, 8 }
  0xca   :  { %v2722_v19 = vsub.s32 %v770_v0, %v773_v26  ;;  %v828_v40 = vsub.s32 32, %v827_v33  ;;  %1756 = vst [vmem:[#allocation6] sm:$0xff] %v1027_v45  ;;  %vm1124_vm14 = vcmp.eq.s32.totalorder %v2673_v39, 0  ;;  %v830_v21 = vshll.u32 %v2013_v57, %v827_v33 }
  0xcb   :  { %v692_v18 = vsel %vm609_vm3, %v691_v20, %v690_v3  ;;  %v833_v50 = vshll.u32 %v2014_v59, %v827_v33  ;;  %v836_v58 = vshll.u32 %v2015_v61, %v827_v33  ;;  %v796_v0 = vsub.s32 4, %v2697_v17 }
  0xcc   :  { %v695_v13 = vsel %vm2704_vm13, %v2197_v36, %v692_v18  ;;  %v776_v29 = vsub.s32 0, %v2722_v19  ;;  %v826_v62 = vshrl.u32 %v825_v51, 5  ;;  %v831_v34 = vshrl.u32 %v2014_v59, %v828_v40 }
  0xcd   :  { %1926 = vcosq.f32 %v695_v13  ;;  %v834_v12 = vshrl.u32 %v2015_v61, %v828_v40  ;;  %v837_v30 = vshrl.u32 %v2016_v63, %v828_v40  ;;  %v829_v37 = vshrl.u32 %v2013_v57, %v828_v40 }
  0xce   :  { %1928 = vsinq.f32 %v695_v13  ;;  %v1824_v41 = vmin.u32 %v776_v29, %v2722_v19  ;;  %vm1123_vm12 = vcmp.lt.s32.totalorder %v2673_v39, 2  ;;  %v1126_v27 = vsel %vm1124_vm14, %v2384_v42, %v291_v4 }
  0xcf   :  { %vm705_vm3 = vcmp.eq.s32.totalorder %v2715_v53, 2  ;;  %v832_v59 = vor.u32 %v831_v34, %v830_v21  ;;  %v835_v14 = vor.u32 %v834_v12, %v833_v50  ;;  %v838_v61 = vor.u32 %v837_v30, %v836_v58 }
  0xd0   :  { %vm1127_vm4 = vcmp.eq.s32.totalorder %v2673_v39, 2  ;;  %vm702_vm5 = vcmp.eq.s32.totalorder %v2715_v53, 0  ;;  %v778_v15 = vclz %v1824_v41  ;;  %v839_v57 = vshll.u32 %v2016_v63, %v827_v33 }
  0xd1   :  { %v840_v9 = vshrl.u32 %v2017_v1, %v828_v40  ;;  %v842_v56 = vshll.u32 %v2017_v1, %v827_v33  ;;  %vm701_vm6 = vcmp.lt.s32.totalorder %v2715_v53, 2  ;;  %v843_v4 = vshrl.u32 %v2018_v10, %v828_v40 }
  0xd2   :  { %vm845_vm7 = vcmp.lt.s32.totalorder %v826_v62, 1  ;;  %vm846_vm8 = vcmp.lt.s32.totalorder %v826_v62, 2  ;;  %vm847_vm9 = vcmp.lt.s32.totalorder %v826_v62, 3  ;;  %vm699_vm10 = vweird.f32 %v2197_v36 }
  0xd3   :  { %v1825_v54 = vadd.s32 4294967294, %v778_v15  ;;  %v841_v7 = vor.u32 %v840_v9, %v839_v57  ;;  %vm848_vm11 = vcmp.lt.s32.totalorder %v826_v62, 4  ;;  %v849_v3 = vsel %vm845_vm7, %v829_v37, %v832_v59 }
  0xd4   :  { %v844_v51 = vor.u32 %v843_v4, %v842_v56  ;;  %v850_v47 = vsel %vm848_vm11, %v838_v61, 2102212464  ;;  %v853_v63 = vsel %vm845_vm7, %v832_v59, %v835_v14  ;;  %v857_v26 = vsel %vm845_vm7, %v835_v14, %v838_v61 }
  0xd5   :  { %vm712_vm13 = vcmp.lt.s32.totalorder %v2517_v46, 0  ;;  %vm1826_vm14 = vcmp.lt.s32.totalorder %v1825_v54, 0  ;;  %v851_v1 = vsel %vm847_vm9, %v835_v14, %v850_v47  ;;  %v854_v33 = vsel %vm848_vm11, %v841_v7, 920167782 }
  0xd6   :  { %v1129_v10 = vsel %vm1127_vm4, %v294_v35, %v2387_v48  ;;  %v781_v20 = vsel %vm1826_vm14, 0, %v1825_v54  ;;  %v852_v45 = vsel %vm846_vm8, %v849_v3, %v851_v1  ;;  %v855_v40 = vsel %vm847_vm9, %v838_v61, %v854_v33 }
  0xd7   :  { %v858_v18 = vsel %vm848_vm11, %v844_v51, 1326507024  ;;  %v782_v21 = vsub.s32 32, %v781_v20  ;;  %v783_v50 = vshll.u32 %v2722_v19, %v781_v20  ;;  %v786_v58 = vsub.s32 4294967266, %v781_v20  ;;  %v2768_v29 = vpop.eup %1926 }
  0xd8   :  { %v856_v13 = vsel %vm846_vm8, %v853_v63, %v855_v40  ;;  %v859_v34 = vsel %vm847_vm9, %v841_v7, %v858_v18  ;;  %v868_v48 = vmul.u32 %v2724_v28, %v852_v45  ;;  %v2777_v35 = vpop.eup %1928  ;;  %v706_v30 = vxor.u32 2147483648, %v2768_v29 }
  0xd9   :  { %v2772_v42 = vmul.u32.u64.low %v2724_v28, %v856_v13  ;;  %v2773_v12 = vmul.u32.u64.high %v2724_v28, %v856_v13, %v2772_v42  ;;  %v784_v19 = vshrl.u32 %v2718_v52, %v782_v21  ;;  %v787_v41 = vadd.s32 127, %v786_v58 }
  0xda   :  { %v860_v37 = vsel %vm846_vm8, %v857_v26, %v859_v34  ;;  %v703_v59 = vxor.u32 2147483648, %v2777_v35  ;;  %v1130_v15 = vsel %vm1123_vm12, %v1126_v27, %v1129_v10  ;;  %v707_v57 = vsel %vm705_vm3, %v706_v30, %v2777_v35 }
  0xdb   :  { %v2784_v14 = vmul.u32.u64.low %v2724_v28, %v860_v37  ;;  %v2785_v61 = vmul.u32.u64.high %v2724_v28, %v860_v37, %v2784_v14  ;;  %v2933_v52 = vand.u32 2147483647, %v2517_v46  ;;  %v785_v9 = vor.u32 %v784_v19, %v783_v50 }
  0xdc   :  { %v788_v56 = vshll.u32 %v787_v41, 23  ;;  %v1131_v28 = vsel %vm287_vm2, nan, %v1130_v15  ;;  %v704_v39 = vsel %vm702_vm5, %v2768_v29, %v703_v59  ;;  %v871_v27 = vadd.s32 1, %v2773_v12 }
  0xdd   :  { %vm2796_vm4 = vcmp.le.f32.partialorder %v2933_v52, 0.7853982  ;;  %1757 = vst [vmem:[#allocation6 + $0x8] sm:$0xff] %v1131_v28  ;;  %v1225_v4 = vadd.s32 3, %v2427_v38  ;;  %v1329_v54 = vadd.s32 3, %v2535_v6  ;;  %v708_v7 = vsel %vm701_vm6, %v704_v39, %v707_v57 }
  0xde   :  { %v789_v3 = vor.u32 4788187, %v788_v56  ;;  %v792_v51 = vcvt.s32.f32 %v785_v9  ;;  %v1433_v22 = vadd.s32 3, %v2594_v32  ;;  %v709_v47 = vsel %vm699_vm10, nan, %v708_v7 }
  0xdf   :  { %v797_v63 = vsel %vm712_vm13, %v796_v0, %v2697_v17  ;;  %vm870_vm2 = vc.u32 %v2785_v61, %v2772_v42  ;;  %v1226_v38 = vand.u32 3, %v1225_v4  ;;  %921 = vst [vmem:[#allocation5 + $0x28] sm:$0xff] %v709_v47  ;;  %v1330_v26 = vand.u32 3, %v1329_v54 }
  0xe0   :  { %v790_v6 = vand.u32 2147483647, %v789_v3  ;;  %v872_v53 = vsel %vm870_vm2, %v871_v27, %v2773_v12  ;;  %v1434_v1 = vand.u32 3, %v1433_v22  ;;  %v2936_v10 = vxor.u32 2147483648, %v2471_v55 }
  0xe1   :  { %v873_v32 = vadd.s32 %v872_v53, %v868_v48  ;;  %vm1227_vm12 = vcmp.lt.s32.totalorder %v1226_v38, 2  ;;  %vm1228_vm3 = vcmp.eq.s32.totalorder %v1226_v38, 0  ;;  %vm1231_vm5 = vcmp.eq.s32.totalorder %v1226_v38, 2 }
  0xe2   :  { %v793_v33 = vmul.f32 %v792_v51, %v790_v6  ;;  %v1230_v20 = vsel %vm1228_vm3, %v2468_v24, %v2936_v10  ;;  %v2937_v17 = vxor.u32 2147483648, %v2468_v24  ;;  %vm1331_vm6 = vcmp.lt.s32.totalorder %v1330_v26, 2 }
  0xe3   :  { %v874_v45 = vadd.s32 536870912, %v873_v32  ;;  %vm1332_vm7 = vcmp.eq.s32.totalorder %v1330_v26, 0  ;;  %vm1335_vm8 = vcmp.eq.s32.totalorder %v1330_v26, 2  ;;  %v2938_v50 = vxor.u32 2147483648, %v2578_v2 }
  0xe4   :  { %v1233_v0 = vsel %vm1231_vm5, %v2937_v17, %v2471_v55  ;;  %v794_v18 = vxor.u32 2147483648, %v793_v33  ;;  %v2939_v13 = vxor.u32 2147483648, %v2571_v31  ;;  %vm1435_vm9 = vcmp.lt.s32.totalorder %v1434_v1, 2 }
  0xe5   :  { %v1234_v40 = vsel %vm1227_vm12, %v1230_v20, %v1233_v0  ;;  %v1334_v58 = vsel %vm1332_vm7, %v2571_v31, %v2938_v50  ;;  %v2837_v12 = vshrl.u32 %v874_v45, 30  ;;  %vm1436_vm11 = vcmp.eq.s32.totalorder %v1434_v1, 0 }
  0xe6   :  { %v1235_v21 = vsel %vm390_vm0, nan, %v1234_v40  ;;  %v1337_v34 = vsel %vm1335_vm8, %v2939_v13, %v2578_v2  ;;  %v795_v55 = vsel %vm712_vm13, %v794_v18, %v793_v33  ;;  %v1438_v48 = vsel %vm1436_vm11, %v2664_v11, %v600_v16 }
  0xe7   :  { %1758 = vst [vmem:[#allocation6 + $0x10] sm:$0xff] %v1235_v21  ;;  %v1338_v24 = vsel %vm1331_vm6, %v1334_v58, %v1337_v34  ;;  %vm1439_vm0 = vcmp.eq.s32.totalorder %v1434_v1, 2  ;;  %v798_v31 = vsel %vm2796_vm4, %v2517_v46, %v795_v55  ;;  %v876_v2 = vshll.u32 %v2837_v12, 30 }
  0xe8   :  { %v1339_v23 = vsel %vm493_vm15, nan, %v1338_v24  ;;  %v1441_v19 = vsel %vm1439_vm0, %v603_v49, %v2675_v60  ;;  %v799_v44 = vsel %vm2796_vm4, 0, %v797_v63  ;;  %1930 = vcosq.f32 %v798_v31 }
  0xe9   :  { %1759 = vst [vmem:[#allocation6 + $0x18] sm:$0xff] %v1339_v23  ;;  %v1442_v41 = vsel %vm1435_vm9, %v1438_v48, %v1441_v19  ;;  %v1537_v37 = vadd.s32 3, %v2711_v25  ;;  %1932 = vsinq.f32 %v798_v31  ;;  %v877_v16 = vsub.s32 %v873_v32, %v876_v2 }
  0xea   :  { %v1443_v14 = vsel %vm596_vm1, nan, %v1442_v41  ;;  %v1641_v52 = vadd.s32 3, %v799_v44  ;;  %v803_v60 = vand.u32 3, %v799_v44  ;;  %vm802_vm1 = vweird.f32 %v2517_v46 }
  0xeb   :  { %1760 = vst [vmem:[#allocation6 + $0x20] sm:$0xff] %v1443_v14  ;;  %v1538_v15 = vand.u32 3, %v1537_v37  ;;  %v879_v57 = vsub.s32 0, %v877_v16  ;;  %v899_v10 = vsub.s32 4, %v2837_v12  ;;  %vm814_vm8 = vcmp.le.f32.partialorder %v813_v5, 0.7853982 }
  0xec   :  { %v1642_v9 = vand.u32 3, %v1641_v52  ;;  %vm805_vm4 = vcmp.eq.s32.totalorder %v803_v60, 0  ;;  %vm808_vm2 = vcmp.eq.s32.totalorder %v803_v60, 2  ;;  %vm804_vm6 = vcmp.lt.s32.totalorder %v803_v60, 2 }
  0xed   :  { %vm1539_vm15 = vcmp.lt.s32.totalorder %v1538_v15, 2  ;;  %vm1540_vm13 = vcmp.eq.s32.totalorder %v1538_v15, 0  ;;  %vm1543_vm14 = vcmp.eq.s32.totalorder %v1538_v15, 2  ;;  %v1828_v11 = vmin.u32 %v879_v57, %v877_v16 }
  0xee   :  { %v1542_v49 = vsel %vm1540_vm13, %v2768_v29, %v703_v59  ;;  %v1545_v25 = vsel %vm1543_vm14, %v706_v30, %v2777_v35  ;;  %v869_v59 = vadd.s32 %v2772_v42, %v2785_v61  ;;  %vm1644_vm3 = vcmp.eq.s32.totalorder %v1642_v9, 0 }
  0xef   :  { %v881_v62 = vclz %v1828_v11  ;;  %v1546_v8 = vsel %vm1539_vm15, %v1542_v49, %v1545_v25  ;;  %vm1647_vm5 = vcmp.eq.s32.totalorder %v1642_v9, 2  ;;  %vm1643_vm7 = vcmp.lt.s32.totalorder %v1642_v9, 2 }
  0xf0   :  { %v1547_v56 = vsel %vm699_vm10, nan, %v1546_v8  ;;  %vm815_vm10 = vcmp.lt.s32.totalorder %v2626_v43, 0 }
  0xf1   :  { %v1829_v28 = vadd.s32 4294967294, %v881_v62  ;;  %1761 = vst [vmem:[#allocation6 + $0x28] sm:$0xff] %v1547_v56  ;;  %v900_v0 = vsel %vm815_vm10, %v899_v10, %v2837_v12 }
  0xf2   :  { %v1931_v39 = vpop.eup %1930  ;;  %v902_v40 = vsel %vm814_vm8, 0, %v900_v0 }
  0xf3   :  { %v1933_v27 = vpop.eup %1932  ;;  %v809_v4 = vxor.u32 2147483648, %v1931_v39  ;;  %vm1830_vm12 = vcmp.lt.s32.totalorder %v1829_v28, 0  ;;  %v1745_v18 = vadd.s32 3, %v902_v40  ;;  %v906_v21 = vand.u32 3, %v902_v40 }
  0xf4   :  { %v806_v29 = vxor.u32 2147483648, %v1933_v27  ;;  %v884_v35 = vsel %vm1830_vm12, 0, %v1829_v28 }
  0xf5   :  { %v810_v36 = vsel %vm808_vm2, %v809_v4, %v1933_v27  ;;  %v885_v30 = vsub.s32 32, %v884_v35  ;;  %v886_v54 = vshll.u32 %v877_v16, %v884_v35  ;;  %v889_v7 = vsub.s32 4294967266, %v884_v35 }
  0xf6   :  { %v807_v3 = vsel %vm805_vm4, %v1931_v39, %v806_v29  ;;  %v1646_v51 = vsel %vm1644_vm3, %v1931_v39, %v806_v29  ;;  %v1649_v22 = vsel %vm1647_vm5, %v809_v4, %v1933_v27  ;;  %v1746_v50 = vand.u32 3, %v1745_v18 }
  0xf7   :  { %v811_v47 = vsel %vm804_vm6, %v807_v3, %v810_v36  ;;  %v887_v63 = vshrl.u32 %v869_v59, %v885_v30  ;;  %v890_v42 = vadd.s32 127, %v889_v7  ;;  %v1650_v61 = vsel %vm1643_vm7, %v1646_v51, %v1649_v22 }
  0xf8   :  { %v812_v38 = vsel %vm802_vm1, nan, %v811_v47  ;;  %v1651_v6 = vsel %vm802_vm1, nan, %v1650_v61  ;;  %vm911_vm9 = vcmp.eq.s32.totalorder %v906_v21, 2  ;;  %vm1751_vm11 = vcmp.eq.s32.totalorder %v1746_v50, 2 }
  0xf9   :  { %922 = vst [vmem:[#allocation5 + $0x30] sm:$0xff] %v812_v38  ;;  %v888_v53 = vor.u32 %v887_v63, %v886_v54  ;;  %v891_v26 = vshll.u32 %v890_v42, 23  ;;  %1762 = vst [vmem:[#allocation6 + $0x30] sm:$0xff] %v1651_v6  ;;  %vm908_vm0 = vcmp.eq.s32.totalorder %v906_v21, 0  ;;  %vm1748_vm15 = vcmp.eq.s32.totalorder %v1746_v50, 0 }
  0xfa   :  { %vm907_vm13 = vcmp.lt.s32.totalorder %v906_v21, 2  ;;  %vm1747_vm14 = vcmp.lt.s32.totalorder %v1746_v50, 2  ;;  %vm905_vm1 = vweird.f32 %v2626_v43 }
  0xfb   :  { %v892_v1 = vor.u32 4788187, %v891_v26  ;;  %v895_v32 = vcvt.s32.f32 %v888_v53 }
  0xfd   :  { %v893_v33 = vand.u32 2147483647, %v892_v1 }
  0xff   :  { %v896_v20 = vmul.f32 %v895_v32, %v893_v33 }
 0x101   :  { %v897_v17 = vxor.u32 2147483648, %v896_v20 }
 0x103   :  { %v898_v46 = vsel %vm815_vm10, %v897_v17, %v896_v20 }
 0x104   :  { %v901_v45 = vsel %vm814_vm8, %v2626_v43, %v898_v46 }
 0x105   :  { %1934 = vcosq.f32 %v901_v45 }
 0x106   :  { %1936 = vsinq.f32 %v901_v45 }
 0x10f   :  { %v1935_v58 = vpop.eup %1934 }
 0x110   :  { %v1937_v13 = vpop.eup %1936  ;;  %v912_v34 = vxor.u32 2147483648, %v1935_v58 }
 0x111   :  { %v909_v5 = vxor.u32 2147483648, %v1937_v13 }
 0x112   :  { %v913_v12 = vsel %vm911_vm9, %v912_v34, %v1937_v13  ;;  %v1753_v24 = vsel %vm1751_vm11, %v912_v34, %v1937_v13 }
 0x113   :  { %v910_v55 = vsel %vm908_vm0, %v1935_v58, %v909_v5  ;;  %v1750_v23 = vsel %vm1748_vm15, %v1935_v58, %v909_v5 }
 0x114   :  { %v914_v48 = vsel %vm907_vm13, %v910_v55, %v913_v12  ;;  %v1754_v31 = vsel %vm1747_vm14, %v1750_v23, %v1753_v24 }
 0x115   :  { %v915_v2 = vsel %vm905_vm1, nan, %v914_v48  ;;  %v1755_v19 = vsel %vm905_vm1, nan, %v1754_v31 }
 0x116   :  { %923 = vst [vmem:[#allocation5 + $0x38] sm:$0xff] %v915_v2  ;;  %1763 = vst [vmem:[#allocation6 + $0x38] sm:$0xff] %v1755_v19 }
 0x117   :  { %1973 = shalt.err (!%p1970_p12)
}
 0x118   :  { %s1974_s7 = scalar_lea.hbm %s2914_s2, 1024 }
 0x119   :  { %p1975_p13 = scmp.ne.s32.totalorder %s2914_s2, %s1974_s7  ;;  %p1978_p0 = scmp.lt.u32.totalorder %s1974_s7, %s2914_s2 }
 0x11b   :  { %p1980_p1 = pnand %p1978_p0, %p1975_p13 }
 0x11d   :  { %1983 = shalt.err (!%p1980_p1)
}
 0x11e   :  { %s2021_s12 = smov 128   ;;  %s2022_s13 = smov 8  }
 0x11f   :  { %1775 = dma.vmem_to_hbm [thread:$0]  %s1770_s28, 1024, %s2914_s2, [#allocation4], %s2021_s12, %s2021_s12, %s2022_s13  }
 0x120   :  { %s1984_s16 = scalar_lea.vmem %s2881_s30, 1024  ;;  %p1989_p3 = scmp.lt.s32.totalorder %s2881_s30, %s2881_s30 }
 0x121   :  { %p1985_p2 = scmp.ne.s32.totalorder %s2881_s30, %s1984_s16  ;;  %p1990_p4 = scmp.lt.s32.totalorder %s1984_s16, %s1984_s16 }
 0x123   :  { %p1991_p5 = por %p1990_p4, %p1989_p3 }
 0x125   :  { %p1992_p6 = pnand %p1991_p5, %p1985_p2 }
 0x127   :  { %1995 = shalt.err (!%p1992_p6)
}
 0x128   :  { %s1996_s19 = scalar_lea.hbm %s2915_s3, 1024 }
 0x129   :  { %p1997_p7 = scmp.ne.s32.totalorder %s2915_s3, %s1996_s19  ;;  %p2000_p8 = scmp.lt.u32.totalorder %s1996_s19, %s2915_s3 }
 0x12b   :  { %p2002_p9 = pnand %p2000_p8, %p1997_p7 }
 0x12d   :  { %2005 = shalt.err (!%p2002_p9)
}
 0x12e   :  { %1787 = dma.vmem_to_hbm [thread:$0]  %s2881_s30, 1024, %s2915_s3, [#allocation7], %s2021_s12, %s2021_s12, %s2022_s13  }
 0x12f   :  { %2008 = dma.done.wait [#allocation4], 1024  }
 0x130   :  { %2009 = vsyncadd [#allocation4], 4294966272 }
 0x131   :  { %2010 = dma.done.wait [#allocation7], 1024  }
 0x132   :  { %2011 = vsyncadd [#allocation7], 4294966272 }
 0x133   :  { %1794 = vsyncpa [#allocation3], 1 }
 0x134   :  { %1795 = vsyncpa [#allocation4], 1 }
 0x135   :  { %1796 = vsyncpa [#allocation7], 1 }

</bundles_post_ra>
